<compile_context>
chip_gen: v7x
topology: tpu7x:2x2x1
jax: 0.10.0
libtpu: 0.0.40
codegen_flags: <defaults>
</compile_context>

<pallas_src>
import math

import jax
import jax.numpy as jnp
from jax import lax
from jax.experimental import pallas as pl
from jax.experimental.pallas import tpu as pltpu

# --- model hyperparameters (small, consistent with the module's structure) ---
EMBED_DIM = 128
NHEAD = 4
FF_DIM = 256
HEAD_DIM = EMBED_DIM // NHEAD
LN_EPS = 1e-5


def _layernorm(h, w, b):
    # single-pass statistics (sum and sum-of-squares together)
    n = h.shape[-1]
    s1 = jnp.sum(h, axis=-1, keepdims=True)
    s2 = jnp.sum(h * h, axis=-1, keepdims=True)
    mu = s1 * (1.0 / n)
    var = jnp.maximum(s2 * (1.0 / n) - mu * mu, 0.0)
    return (h - mu) * lax.rsqrt(var + LN_EPS) * w + b


def _gelu_exact(x):
    # nn.GELU() default: exact erf-based GELU
    return 0.5 * x * (1.0 + lax.erf(x / math.sqrt(2.0)))


def encoder_block_kernel(
    x_ref,            # (Bt, S, E) f32
    wqkv_ref,         # (E, 3E)   bf16
    wo_ref,           # (E, E)    bf16
    w1_ref,           # (E, F)    bf16
    w2_ref,           # (F, E)    bf16
    bqkv_ref,         # (1, 3E)   f32
    b1_ref,           # (1, F)    f32
    vec_ref,          # (6, E)    f32: ln1w, ln1b, ln2w, ln2b, bo, b2
    out_ref,          # (Bt, S, E)
):
    bt, S, E = x_ref.shape
    H, D = NHEAD, HEAD_DIM
    N = bt * S

    x = x_ref[...].astype(jnp.float32).reshape(N, E)

    vec = vec_ref[...]
    ln1w, ln1b = vec[0:1, :], vec[1:2, :]
    ln2w, ln2b = vec[2:3, :], vec[3:4, :]
    bo, b2 = vec[4:5, :], vec[5:6, :]

    # ---- LN1 ----
    h = _layernorm(x, ln1w, ln1b)

    # ---- fused Q/K/V projection: one (N,128)@(128,384) MXU matmul ----
    qkv = jnp.dot(h.astype(jnp.bfloat16), wqkv_ref[...],
                  preferred_element_type=jnp.float32) + bqkv_ref[...]
    qkv = qkv.astype(jnp.bfloat16)

    def split_heads(t):
        # (N, E) -> (H*bt, S, D); g = head*bt + batch (row-major preserving)
        parts = [t[:, i * D:(i + 1) * D] for i in range(H)]
        return jnp.stack(parts, axis=0).reshape(H * bt, S, D)

    qh = split_heads(qkv[:, :E])           # (G, S, D) bf16
    kh = split_heads(qkv[:, E:2 * E])
    vh = split_heads(qkv[:, 2 * E:])

    # ---- batched attention over G = NHEAD * Bt ----
    s = jnp.einsum('gqd,gkd->gqk', qh, kh,
                   preferred_element_type=jnp.float32)
    s = s * (1.0 / math.sqrt(D))
    s = s - jnp.max(s, axis=-1, keepdims=True)
    p = jnp.exp(s)
    p = p * pl.reciprocal(jnp.sum(p, axis=-1, keepdims=True), approx=True)
    o = jnp.einsum('gqk,gkd->gqd', p.astype(jnp.bfloat16), vh,
                   preferred_element_type=jnp.float32)     # (G, S, D) f32

    # merge heads back to (N, E): head i occupies lanes [i*D, (i+1)*D)
    o = jnp.concatenate(
        [o[i * bt:(i + 1) * bt].reshape(N, D) for i in range(H)], axis=-1)

    # output projection: full K = 128 matmul
    attn = jnp.dot(o.astype(jnp.bfloat16), wo_ref[...],
                   preferred_element_type=jnp.float32) + bo

    # residual (dropout = identity at inference)
    x = x + attn

    # ---- LN2 + feed-forward ----
    h2 = _layernorm(x, ln2w, ln2b)
    f = jnp.dot(h2.astype(jnp.bfloat16), w1_ref[...],
                preferred_element_type=jnp.float32) + b1_ref[...]
    f = _gelu_exact(f)
    f = jnp.dot(f.astype(jnp.bfloat16), w2_ref[...],
                preferred_element_type=jnp.float32) + b2

    out_ref[...] = (x + f).reshape(bt, S, E).astype(out_ref.dtype)


def _pick_block_batch(B, S, target_rows=512):
    """Batch elements per grid step: aim for ~target_rows rows per step,
    but keep >= 2 grid steps (v7x has 2 TensorCores) when B allows."""
    if S % 8 != 0:
        return 1
    bt = max(1, min(B, max(1, target_rows // S)))
    while bt > 1 and B // bt < 2:
        bt -= 1
    while B % bt != 0:
        bt -= 1
    return bt


def transformer_encoder_block(x, params, *, target_rows=512):
    """x: (B, S, E) float32. params: dict from init_params()."""
    B, S, E = x.shape
    bt = _pick_block_batch(B, S, target_rows)
    grid = (B // bt,)

    param_list = [
        params["wqkv_t"], params["wo_t"], params["w1_t"], params["w2_t"],
        params["bqkv"], params["b1"], params["vec_e"],
    ]

    def full_spec(shape):
        nd = len(shape)
        return pl.BlockSpec(shape, lambda b, _nd=nd: (0,) * _nd)

    in_specs = [pl.BlockSpec((bt, S, E), lambda b: (b, 0, 0))]
    in_specs += [full_spec(p.shape) for p in param_list]
    out_spec = pl.BlockSpec((bt, S, E), lambda b: (b, 0, 0))

    return pl.pallas_call(
        encoder_block_kernel,
        out_shape=jax.ShapeDtypeStruct((B, S, E), x.dtype),
        grid_spec=pltpu.PrefetchScalarGridSpec(
            num_scalar_prefetch=0,
            grid=grid,
            in_specs=in_specs,
            out_specs=out_spec,
        ),
        compiler_params=pltpu.CompilerParams(
            dimension_semantics=("parallel",),
            vmem_limit_bytes=32 * 1024 * 1024,
        ),
    )(x, *param_list)


def init_params(key):
    """Deterministic init. PyTorch Linear stores W as (out, in); we
    pre-transpose to (in, out), fuse q/k/v, and store MXU weights as bf16."""
    ks = jax.random.split(key, 10)
    E, F = EMBED_DIM, FF_DIM
    s = 0.02
    wq = jax.random.normal(ks[0], (E, E), jnp.float32) * s
    wk = jax.random.normal(ks[1], (E, E), jnp.float32) * s
    wv = jax.random.normal(ks[2], (E, E), jnp.float32) * s
    wo = jax.random.normal(ks[3], (E, E), jnp.float32) * s
    w1 = jax.random.normal(ks[4], (F, E), jnp.float32) * s   # ff Linear(E, F)
    w2 = jax.random.normal(ks[5], (E, F), jnp.float32) * s   # ff Linear(F, E)
    bq = jax.random.normal(ks[6], (E,), jnp.float32) * s
    bk = jax.random.normal(ks[7], (E,), jnp.float32) * s
    bv = jax.random.normal(ks[8], (E,), jnp.float32) * s
    bo = jax.random.normal(ks[9], (E,), jnp.float32) * s
    b1 = jnp.full((F,), 0.01, jnp.float32)
    b2 = jnp.full((E,), -0.01, jnp.float32)
    ln1w = jnp.ones((E,), jnp.float32); ln1b = jnp.zeros((E,), jnp.float32)
    ln2w = jnp.ones((E,), jnp.float32); ln2b = jnp.zeros((E,), jnp.float32)

    wqkv_t = jnp.concatenate([wq.T, wk.T, wv.T], axis=1)       # (E, 3E)
    bqkv = jnp.concatenate([bq, bk, bv])[None, :]              # (1, 3E)
    vec_e = jnp.stack([ln1w, ln1b, ln2w, ln2b, bo, b2], axis=0)  # (6, E)
    return dict(
        wqkv_t=wqkv_t.astype(jnp.bfloat16),
        wo_t=wo.T.astype(jnp.bfloat16),
        w1_t=w1.T.astype(jnp.bfloat16),
        w2_t=w2.T.astype(jnp.bfloat16),
        bqkv=bqkv,
        b1=b1[None, :],
        vec_e=vec_e,
    )


def reference_block(x, p):
    """Pure-JAX f32 reference mirroring torch semantics (dropout = identity)."""
    E, H, D = EMBED_DIM, NHEAD, HEAD_DIM
    wqkv = p["wqkv_t"].astype(jnp.float32)
    wo = p["wo_t"].astype(jnp.float32)
    w1 = p["w1_t"].astype(jnp.float32)
    w2 = p["w2_t"].astype(jnp.float32)
    bqkv = p["bqkv"][0]
    b1 = p["b1"][0]
    vec = p["vec_e"]
    ln1w, ln1b, ln2w, ln2b, bo, b2 = (vec[i] for i in range(6))

    def ln(h, w, b):
        mu = jnp.mean(h, axis=-1, keepdims=True)
        var = jnp.mean((h - mu) ** 2, axis=-1, keepdims=True)
        return (h - mu) * lax.rsqrt(var + LN_EPS) * w + b

    B, S, _ = x.shape
    h = ln(x, ln1w, ln1b)
    qkv = h @ wqkv + bqkv
    q, k, v = qkv[..., :E], qkv[..., E:2 * E], qkv[..., 2 * E:]
    q = q.reshape(B, S, H, D).transpose(0, 2, 1, 3)
    k = k.reshape(B, S, H, D).transpose(0, 2, 1, 3)
    v = v.reshape(B, S, H, D).transpose(0, 2, 1, 3)
    s = jnp.einsum("bhqd,bhkd->bhqk", q, k) / math.sqrt(D)
    pa = jax.nn.softmax(s, axis=-1)
    o = jnp.einsum("bhqk,bhkd->bhqd", pa, v)
    o = o.transpose(0, 2, 1, 3).reshape(B, S, E)
    attn = o @ wo + bo
    x = x + attn
    h2 = ln(x, ln2w, ln2b)
    f = h2 @ w1 + b1
    f = jax.nn.gelu(f, approximate=False)
    f = f @ w2 + b2
    return x + f


if __name__ == "__main__":
    key = jax.random.PRNGKey(0)
    kx, kp = jax.random.split(key)
    B, S = 2, 16
    x = jax.random.normal(kx, (B, S, EMBED_DIM), jnp.float32)
    params = init_params(kp)

    out = jax.block_until_ready(transformer_encoder_block(x, params))
    ref = reference_block(x, params)

    assert out.shape == (B, S, EMBED_DIM)
    # bf16 MXU operands + approx reciprocal -> compare at loosened tolerance.
    max_err = float(jnp.max(jnp.abs(out - ref)))
    assert jnp.allclose(out, ref, atol=2e-2, rtol=2e-2), max_err

    # TODO(synk): dropout is implemented as identity (inference mode); training-mode
    # stochastic dropout would need pltpu.prng_* inside the kernel.
    print("KERNEL_OK")
</pallas_src>

<mosaic_0001>
module attributes {stable_mosaic.version = 11 : i64} {
  func.func @encoder_block_kernel(%arg0: i32, %arg1: memref<1x16x128xf32, #tpu.memory_space<vmem>>, %arg2: memref<128x384xbf16, #tpu.memory_space<vmem>>, %arg3: memref<128x128xbf16, #tpu.memory_space<vmem>>, %arg4: memref<128x256xbf16, #tpu.memory_space<vmem>>, %arg5: memref<256x128xbf16, #tpu.memory_space<vmem>>, %arg6: memref<1x384xf32, #tpu.memory_space<vmem>>, %arg7: memref<1x256xf32, #tpu.memory_space<vmem>>, %arg8: memref<6x128xf32, #tpu.memory_space<vmem>>, %arg9: memref<1x16x128xf32, #tpu.memory_space<vmem>>) attributes {dimension_semantics = [#tpu.dimension_semantics<parallel>], iteration_bounds = array<i64: 2>, scalar_prefetch = 0 : i64, scratch_operands = 0 : i64, tpu.core_type = #tpu.core_type<tc>, window_params = [{transform_indices = @transform_0, window_bounds = array<i64: 1, 16, 128>}, {pipeline_mode = #tpu.pipeline_mode<synchronous>, transform_indices = @transform_1, window_bounds = array<i64: 128, 384>}, {pipeline_mode = #tpu.pipeline_mode<synchronous>, transform_indices = @transform_2, window_bounds = array<i64: 128, 128>}, {pipeline_mode = #tpu.pipeline_mode<synchronous>, transform_indices = @transform_3, window_bounds = array<i64: 128, 256>}, {pipeline_mode = #tpu.pipeline_mode<synchronous>, transform_indices = @transform_4, window_bounds = array<i64: 256, 128>}, {pipeline_mode = #tpu.pipeline_mode<synchronous>, transform_indices = @transform_5, window_bounds = array<i64: 1, 384>}, {pipeline_mode = #tpu.pipeline_mode<synchronous>, transform_indices = @transform_6, window_bounds = array<i64: 1, 256>}, {pipeline_mode = #tpu.pipeline_mode<synchronous>, transform_indices = @transform_7, window_bounds = array<i64: 6, 128>}, {transform_indices = @transform_8, window_bounds = array<i64: 1, 16, 128>}]} {
    %c0 = arith.constant 0 : index
    %c0_0 = arith.constant 0 : index
    %c0_1 = arith.constant 0 : index
    %0 = vector.load %arg1[%c0, %c0_0, %c0_1] : memref<1x16x128xf32, #tpu.memory_space<vmem>>, vector<1x16x128xf32>
    %1 = vector.shape_cast %0 : vector<1x16x128xf32> to vector<16x128xf32>
    %c0_2 = arith.constant 0 : index
    %c0_3 = arith.constant 0 : index
    %2 = vector.load %arg8[%c0_2, %c0_3] : memref<6x128xf32, #tpu.memory_space<vmem>>, vector<6x128xf32>
    %3 = vector.extract_strided_slice %2 {offsets = [0, 0], sizes = [1, 128], strides = [1, 1]} : vector<6x128xf32> to vector<1x128xf32>
    %4 = vector.extract_strided_slice %2 {offsets = [1, 0], sizes = [1, 128], strides = [1, 1]} : vector<6x128xf32> to vector<1x128xf32>
    %5 = vector.extract_strided_slice %2 {offsets = [2, 0], sizes = [1, 128], strides = [1, 1]} : vector<6x128xf32> to vector<1x128xf32>
    %6 = vector.extract_strided_slice %2 {offsets = [3, 0], sizes = [1, 128], strides = [1, 1]} : vector<6x128xf32> to vector<1x128xf32>
    %7 = vector.extract_strided_slice %2 {offsets = [4, 0], sizes = [1, 128], strides = [1, 1]} : vector<6x128xf32> to vector<1x128xf32>
    %8 = vector.extract_strided_slice %2 {offsets = [5, 0], sizes = [1, 128], strides = [1, 1]} : vector<6x128xf32> to vector<1x128xf32>
    %cst = arith.constant dense<0.000000e+00> : vector<16xf32>
    %9 = vector.multi_reduction <add>, %1, %cst [1] : vector<16x128xf32> to vector<16xf32>
    %10 = vector.shape_cast %9 : vector<16xf32> to vector<16x1xf32>
    %11 = arith.mulf %1, %1 : vector<16x128xf32>
    %cst_4 = arith.constant dense<0.000000e+00> : vector<16xf32>
    %12 = vector.multi_reduction <add>, %11, %cst_4 [1] : vector<16x128xf32> to vector<16xf32>
    %13 = vector.shape_cast %12 : vector<16xf32> to vector<16x1xf32>
    %cst_5 = arith.constant 7.812500e-03 : f32
    %14 = vector.broadcast %cst_5 : f32 to vector<16x1xf32>
    %15 = arith.mulf %10, %14 : vector<16x1xf32>
    %cst_6 = arith.constant 7.812500e-03 : f32
    %16 = vector.broadcast %cst_6 : f32 to vector<16x1xf32>
    %17 = arith.mulf %13, %16 : vector<16x1xf32>
    %18 = arith.mulf %15, %15 : vector<16x1xf32>
    %19 = arith.subf %17, %18 : vector<16x1xf32>
    %cst_7 = arith.constant 0.000000e+00 : f32
    %20 = vector.broadcast %cst_7 : f32 to vector<16x1xf32>
    %21 = arith.maximumf %19, %20 : vector<16x1xf32>
    %22 = vector.broadcast %15 : vector<16x1xf32> to vector<16x128xf32>
    %23 = arith.subf %1, %22 : vector<16x128xf32>
    %cst_8 = arith.constant 9.99999974E-6 : f32
    %24 = vector.broadcast %cst_8 : f32 to vector<16x1xf32>
    %25 = arith.addf %21, %24 : vector<16x1xf32>
    %26 = math.rsqrt %25 : vector<16x1xf32>
    %27 = vector.broadcast %26 : vector<16x1xf32> to vector<16x128xf32>
    %28 = arith.mulf %23, %27 : vector<16x128xf32>
    %29 = vector.broadcast %3 : vector<1x128xf32> to vector<16x128xf32>
    %30 = arith.mulf %28, %29 : vector<16x128xf32>
    %31 = vector.broadcast %4 : vector<1x128xf32> to vector<16x128xf32>
    %32 = arith.addf %30, %31 : vector<16x128xf32>
    %33 = arith.truncf %32 : vector<16x128xf32> to vector<16x128xbf16>
    %c0_9 = arith.constant 0 : index
    %c0_10 = arith.constant 0 : index
    %34 = vector.load %arg2[%c0_9, %c0_10] : memref<128x384xbf16, #tpu.memory_space<vmem>>, vector<128x384xbf16>
    %cst_11 = arith.constant dense<0.000000e+00> : vector<16x384xf32>
    %35 = tpu.matmul %33, %34, %cst_11 {dimension_numbers = #tpu.dot_dimension_numbers<[1], [0], [0], [1], [0, 0, 1, 1], [], []>} : vector<16x128xbf16>, vector<128x384xbf16>, vector<16x384xf32> -> vector<16x384xf32>
    %c0_12 = arith.constant 0 : index
    %c0_13 = arith.constant 0 : index
    %36 = vector.load %arg6[%c0_12, %c0_13] : memref<1x384xf32, #tpu.memory_space<vmem>>, vector<1x384xf32>
    %37 = vector.broadcast %36 : vector<1x384xf32> to vector<16x384xf32>
    %38 = arith.addf %35, %37 : vector<16x384xf32>
    %39 = arith.truncf %38 : vector<16x384xf32> to vector<16x384xbf16>
    %40 = vector.extract_strided_slice %39 {offsets = [0, 0], sizes = [16, 128], strides = [1, 1]} : vector<16x384xbf16> to vector<16x128xbf16>
    %41 = vector.extract_strided_slice %40 {offsets = [0, 0], sizes = [16, 32], strides = [1, 1]} : vector<16x128xbf16> to vector<16x32xbf16>
    %42 = vector.extract_strided_slice %40 {offsets = [0, 32], sizes = [16, 32], strides = [1, 1]} : vector<16x128xbf16> to vector<16x32xbf16>
    %43 = vector.extract_strided_slice %40 {offsets = [0, 64], sizes = [16, 32], strides = [1, 1]} : vector<16x128xbf16> to vector<16x32xbf16>
    %44 = vector.extract_strided_slice %40 {offsets = [0, 96], sizes = [16, 32], strides = [1, 1]} : vector<16x128xbf16> to vector<16x32xbf16>
    %45 = vector.shape_cast %41 : vector<16x32xbf16> to vector<1x16x32xbf16>
    %46 = vector.shape_cast %42 : vector<16x32xbf16> to vector<1x16x32xbf16>
    %47 = vector.shape_cast %43 : vector<16x32xbf16> to vector<1x16x32xbf16>
    %48 = vector.shape_cast %44 : vector<16x32xbf16> to vector<1x16x32xbf16>
    %49 = tpu.concatenate %45, %46, %47, %48 in 0 : vector<1x16x32xbf16>, vector<1x16x32xbf16>, vector<1x16x32xbf16>, vector<1x16x32xbf16> -> vector<4x16x32xbf16>
    %50 = vector.extract_strided_slice %39 {offsets = [0, 128], sizes = [16, 128], strides = [1, 1]} : vector<16x384xbf16> to vector<16x128xbf16>
    %51 = vector.extract_strided_slice %50 {offsets = [0, 0], sizes = [16, 32], strides = [1, 1]} : vector<16x128xbf16> to vector<16x32xbf16>
    %52 = vector.extract_strided_slice %50 {offsets = [0, 32], sizes = [16, 32], strides = [1, 1]} : vector<16x128xbf16> to vector<16x32xbf16>
    %53 = vector.extract_strided_slice %50 {offsets = [0, 64], sizes = [16, 32], strides = [1, 1]} : vector<16x128xbf16> to vector<16x32xbf16>
    %54 = vector.extract_strided_slice %50 {offsets = [0, 96], sizes = [16, 32], strides = [1, 1]} : vector<16x128xbf16> to vector<16x32xbf16>
    %55 = vector.shape_cast %51 : vector<16x32xbf16> to vector<1x16x32xbf16>
    %56 = vector.shape_cast %52 : vector<16x32xbf16> to vector<1x16x32xbf16>
    %57 = vector.shape_cast %53 : vector<16x32xbf16> to vector<1x16x32xbf16>
    %58 = vector.shape_cast %54 : vector<16x32xbf16> to vector<1x16x32xbf16>
    %59 = tpu.concatenate %55, %56, %57, %58 in 0 : vector<1x16x32xbf16>, vector<1x16x32xbf16>, vector<1x16x32xbf16>, vector<1x16x32xbf16> -> vector<4x16x32xbf16>
    %60 = vector.extract_strided_slice %39 {offsets = [0, 256], sizes = [16, 128], strides = [1, 1]} : vector<16x384xbf16> to vector<16x128xbf16>
    %61 = vector.extract_strided_slice %60 {offsets = [0, 0], sizes = [16, 32], strides = [1, 1]} : vector<16x128xbf16> to vector<16x32xbf16>
    %62 = vector.extract_strided_slice %60 {offsets = [0, 32], sizes = [16, 32], strides = [1, 1]} : vector<16x128xbf16> to vector<16x32xbf16>
    %63 = vector.extract_strided_slice %60 {offsets = [0, 64], sizes = [16, 32], strides = [1, 1]} : vector<16x128xbf16> to vector<16x32xbf16>
    %64 = vector.extract_strided_slice %60 {offsets = [0, 96], sizes = [16, 32], strides = [1, 1]} : vector<16x128xbf16> to vector<16x32xbf16>
    %65 = vector.shape_cast %61 : vector<16x32xbf16> to vector<1x16x32xbf16>
    %66 = vector.shape_cast %62 : vector<16x32xbf16> to vector<1x16x32xbf16>
    %67 = vector.shape_cast %63 : vector<16x32xbf16> to vector<1x16x32xbf16>
    %68 = vector.shape_cast %64 : vector<16x32xbf16> to vector<1x16x32xbf16>
    %69 = tpu.concatenate %65, %66, %67, %68 in 0 : vector<1x16x32xbf16>, vector<1x16x32xbf16>, vector<1x16x32xbf16>, vector<1x16x32xbf16> -> vector<4x16x32xbf16>
    "tpu.trace_start"() <{level = 10 : i32, message = "gqd,gkd->gqk"}> : () -> ()
    %cst_14 = arith.constant dense<0.000000e+00> : vector<4x16x16xf32>
    %70 = tpu.matmul %49, %59, %cst_14 {dimension_numbers = #tpu.dot_dimension_numbers<[2], [2], [1], [1], [0, 0, 0, 1, 1, 1], [0], [0]>} : vector<4x16x32xbf16>, vector<4x16x32xbf16>, vector<4x16x16xf32> -> vector<4x16x16xf32>
    "tpu.trace_stop"() : () -> ()
    %cst_15 = arith.constant 0.176776692 : f32
    %71 = vector.broadcast %cst_15 : f32 to vector<4x16x16xf32>
    %72 = arith.mulf %70, %71 : vector<4x16x16xf32>
    %cst_16 = arith.constant dense<0xFF800000> : vector<4x16xf32>
    %73 = vector.multi_reduction <maximumf>, %72, %cst_16 [2] : vector<4x16x16xf32> to vector<4x16xf32>
    %74 = vector.shape_cast %73 : vector<4x16xf32> to vector<4x16x1xf32>
    %75 = vector.broadcast %74 : vector<4x16x1xf32> to vector<4x16x16xf32>
    %76 = arith.subf %72, %75 : vector<4x16x16xf32>
    %77 = math.exp %76 : vector<4x16x16xf32>
    %cst_17 = arith.constant dense<0.000000e+00> : vector<4x16xf32>
    %78 = vector.multi_reduction <add>, %77, %cst_17 [2] : vector<4x16x16xf32> to vector<4x16xf32>
    %79 = vector.shape_cast %78 : vector<4x16xf32> to vector<4x16x1xf32>
    %80 = tpu.reciprocal %79 {approx = true} : vector<4x16x1xf32> -> vector<4x16x1xf32>
    %81 = vector.broadcast %80 : vector<4x16x1xf32> to vector<4x16x16xf32>
    %82 = arith.mulf %77, %81 : vector<4x16x16xf32>
    %83 = arith.truncf %82 : vector<4x16x16xf32> to vector<4x16x16xbf16>
    "tpu.trace_start"() <{level = 10 : i32, message = "gqk,gkd->gqd"}> : () -> ()
    %cst_18 = arith.constant dense<0.000000e+00> : vector<4x16x32xf32>
    %84 = tpu.matmul %83, %69, %cst_18 {dimension_numbers = #tpu.dot_dimension_numbers<[2], [1], [1], [2], [0, 0, 0, 1, 1, 2], [0], [0]>} : vector<4x16x16xbf16>, vector<4x16x32xbf16>, vector<4x16x32xf32> -> vector<4x16x32xf32>
    "tpu.trace_stop"() : () -> ()
    %85 = vector.extract_strided_slice %84 {offsets = [0, 0, 0], sizes = [1, 16, 32], strides = [1, 1, 1]} : vector<4x16x32xf32> to vector<1x16x32xf32>
    %86 = vector.shape_cast %85 : vector<1x16x32xf32> to vector<16x32xf32>
    %87 = vector.extract_strided_slice %84 {offsets = [1, 0, 0], sizes = [1, 16, 32], strides = [1, 1, 1]} : vector<4x16x32xf32> to vector<1x16x32xf32>
    %88 = vector.shape_cast %87 : vector<1x16x32xf32> to vector<16x32xf32>
    %89 = vector.extract_strided_slice %84 {offsets = [2, 0, 0], sizes = [1, 16, 32], strides = [1, 1, 1]} : vector<4x16x32xf32> to vector<1x16x32xf32>
    %90 = vector.shape_cast %89 : vector<1x16x32xf32> to vector<16x32xf32>
    %91 = vector.extract_strided_slice %84 {offsets = [3, 0, 0], sizes = [1, 16, 32], strides = [1, 1, 1]} : vector<4x16x32xf32> to vector<1x16x32xf32>
    %92 = vector.shape_cast %91 : vector<1x16x32xf32> to vector<16x32xf32>
    %93 = tpu.concatenate %86, %88, %90, %92 in 1 : vector<16x32xf32>, vector<16x32xf32>, vector<16x32xf32>, vector<16x32xf32> -> vector<16x128xf32>
    %94 = arith.truncf %93 : vector<16x128xf32> to vector<16x128xbf16>
    %c0_19 = arith.constant 0 : index
    %c0_20 = arith.constant 0 : index
    %95 = vector.load %arg3[%c0_19, %c0_20] : memref<128x128xbf16, #tpu.memory_space<vmem>>, vector<128x128xbf16>
    %cst_21 = arith.constant dense<0.000000e+00> : vector<16x128xf32>
    %96 = tpu.matmul %94, %95, %cst_21 {dimension_numbers = #tpu.dot_dimension_numbers<[1], [0], [0], [1], [0, 0, 1, 1], [], []>} : vector<16x128xbf16>, vector<128x128xbf16>, vector<16x128xf32> -> vector<16x128xf32>
    %97 = vector.broadcast %7 : vector<1x128xf32> to vector<16x128xf32>
    %98 = arith.addf %96, %97 : vector<16x128xf32>
    %99 = arith.addf %1, %98 : vector<16x128xf32>
    %cst_22 = arith.constant dense<0.000000e+00> : vector<16xf32>
    %100 = vector.multi_reduction <add>, %99, %cst_22 [1] : vector<16x128xf32> to vector<16xf32>
    %101 = vector.shape_cast %100 : vector<16xf32> to vector<16x1xf32>
    %102 = arith.mulf %99, %99 : vector<16x128xf32>
    %cst_23 = arith.constant dense<0.000000e+00> : vector<16xf32>
    %103 = vector.multi_reduction <add>, %102, %cst_23 [1] : vector<16x128xf32> to vector<16xf32>
    %104 = vector.shape_cast %103 : vector<16xf32> to vector<16x1xf32>
    %cst_24 = arith.constant 7.812500e-03 : f32
    %105 = vector.broadcast %cst_24 : f32 to vector<16x1xf32>
    %106 = arith.mulf %101, %105 : vector<16x1xf32>
    %cst_25 = arith.constant 7.812500e-03 : f32
    %107 = vector.broadcast %cst_25 : f32 to vector<16x1xf32>
    %108 = arith.mulf %104, %107 : vector<16x1xf32>
    %109 = arith.mulf %106, %106 : vector<16x1xf32>
    %110 = arith.subf %108, %109 : vector<16x1xf32>
    %cst_26 = arith.constant 0.000000e+00 : f32
    %111 = vector.broadcast %cst_26 : f32 to vector<16x1xf32>
    %112 = arith.maximumf %110, %111 : vector<16x1xf32>
    %113 = vector.broadcast %106 : vector<16x1xf32> to vector<16x128xf32>
    %114 = arith.subf %99, %113 : vector<16x128xf32>
    %cst_27 = arith.constant 9.99999974E-6 : f32
    %115 = vector.broadcast %cst_27 : f32 to vector<16x1xf32>
    %116 = arith.addf %112, %115 : vector<16x1xf32>
    %117 = math.rsqrt %116 : vector<16x1xf32>
    %118 = vector.broadcast %117 : vector<16x1xf32> to vector<16x128xf32>
    %119 = arith.mulf %114, %118 : vector<16x128xf32>
    %120 = vector.broadcast %5 : vector<1x128xf32> to vector<16x128xf32>
    %121 = arith.mulf %119, %120 : vector<16x128xf32>
    %122 = vector.broadcast %6 : vector<1x128xf32> to vector<16x128xf32>
    %123 = arith.addf %121, %122 : vector<16x128xf32>
    %124 = arith.truncf %123 : vector<16x128xf32> to vector<16x128xbf16>
    %c0_28 = arith.constant 0 : index
    %c0_29 = arith.constant 0 : index
    %125 = vector.load %arg4[%c0_28, %c0_29] : memref<128x256xbf16, #tpu.memory_space<vmem>>, vector<128x256xbf16>
    %cst_30 = arith.constant dense<0.000000e+00> : vector<16x256xf32>
    %126 = tpu.matmul %124, %125, %cst_30 {dimension_numbers = #tpu.dot_dimension_numbers<[1], [0], [0], [1], [0, 0, 1, 1], [], []>} : vector<16x128xbf16>, vector<128x256xbf16>, vector<16x256xf32> -> vector<16x256xf32>
    %c0_31 = arith.constant 0 : index
    %c0_32 = arith.constant 0 : index
    %127 = vector.load %arg7[%c0_31, %c0_32] : memref<1x256xf32, #tpu.memory_space<vmem>>, vector<1x256xf32>
    %128 = vector.broadcast %127 : vector<1x256xf32> to vector<16x256xf32>
    %129 = arith.addf %126, %128 : vector<16x256xf32>
    %cst_33 = arith.constant 5.000000e-01 : f32
    %130 = vector.broadcast %cst_33 : f32 to vector<16x256xf32>
    %131 = arith.mulf %130, %129 : vector<16x256xf32>
    %cst_34 = arith.constant 1.41421354 : f32
    %132 = vector.broadcast %cst_34 : f32 to vector<16x256xf32>
    %133 = arith.divf %129, %132 : vector<16x256xf32>
    %134 = math.erf %133 : vector<16x256xf32>
    %cst_35 = arith.constant 1.000000e+00 : f32
    %135 = vector.broadcast %cst_35 : f32 to vector<16x256xf32>
    %136 = arith.addf %135, %134 : vector<16x256xf32>
    %137 = arith.mulf %131, %136 : vector<16x256xf32>
    %138 = arith.truncf %137 : vector<16x256xf32> to vector<16x256xbf16>
    %c0_36 = arith.constant 0 : index
    %c0_37 = arith.constant 0 : index
    %139 = vector.load %arg5[%c0_36, %c0_37] : memref<256x128xbf16, #tpu.memory_space<vmem>>, vector<256x128xbf16>
    %cst_38 = arith.constant dense<0.000000e+00> : vector<16x128xf32>
    %140 = tpu.matmul %138, %139, %cst_38 {dimension_numbers = #tpu.dot_dimension_numbers<[1], [0], [0], [1], [0, 0, 1, 1], [], []>} : vector<16x256xbf16>, vector<256x128xbf16>, vector<16x128xf32> -> vector<16x128xf32>
    %141 = vector.broadcast %8 : vector<1x128xf32> to vector<16x128xf32>
    %142 = arith.addf %140, %141 : vector<16x128xf32>
    %143 = arith.addf %99, %142 : vector<16x128xf32>
    %144 = vector.shape_cast %143 : vector<16x128xf32> to vector<1x16x128xf32>
    %c0_39 = arith.constant 0 : index
    %c0_40 = arith.constant 0 : index
    %c0_41 = arith.constant 0 : index
    %145 = vector.load %arg9[%c0_39, %c0_40, %c0_41] : memref<1x16x128xf32, #tpu.memory_space<vmem>>, vector<1x16x128xf32>
    tpu.vector_store %arg9[%c0_39, %c0_40, %c0_41], %144 {strides = array<i32>} : memref<1x16x128xf32, #tpu.memory_space<vmem>>, vector<1x16x128xf32>,
    return
  }
  func.func @transform_0(%arg0: i32) -> (i32, i32, i32) {
    %c0_i32 = arith.constant 0 : i32
    %c0_i32_0 = arith.constant 0 : i32
    %c0_i32_1 = arith.constant 0 : i32
    return %arg0, %c0_i32, %c0_i32_0 : i32, i32, i32
  }
  func.func @transform_1(%arg0: i32) -> (i32, i32) {
    %c0_i32 = arith.constant 0 : i32
    %c0_i32_0 = arith.constant 0 : i32
    %c0_i32_1 = arith.constant 0 : i32
    return %c0_i32, %c0_i32_0 : i32, i32
  }
  func.func @transform_2(%arg0: i32) -> (i32, i32) {
    %c0_i32 = arith.constant 0 : i32
    %c0_i32_0 = arith.constant 0 : i32
    %c0_i32_1 = arith.constant 0 : i32
    return %c0_i32, %c0_i32_0 : i32, i32
  }
  func.func @transform_3(%arg0: i32) -> (i32, i32) {
    %c0_i32 = arith.constant 0 : i32
    %c0_i32_0 = arith.constant 0 : i32
    %c0_i32_1 = arith.constant 0 : i32
    return %c0_i32, %c0_i32_0 : i32, i32
  }
  func.func @transform_4(%arg0: i32) -> (i32, i32) {
    %c0_i32 = arith.constant 0 : i32
    %c0_i32_0 = arith.constant 0 : i32
    %c0_i32_1 = arith.constant 0 : i32
    return %c0_i32, %c0_i32_0 : i32, i32
  }
  func.func @transform_5(%arg0: i32) -> (i32, i32) {
    %c0_i32 = arith.constant 0 : i32
    %c0_i32_0 = arith.constant 0 : i32
    %c0_i32_1 = arith.constant 0 : i32
    return %c0_i32, %c0_i32_0 : i32, i32
  }
  func.func @transform_6(%arg0: i32) -> (i32, i32) {
    %c0_i32 = arith.constant 0 : i32
    %c0_i32_0 = arith.constant 0 : i32
    %c0_i32_1 = arith.constant 0 : i32
    return %c0_i32, %c0_i32_0 : i32, i32
  }
  func.func @transform_7(%arg0: i32) -> (i32, i32) {
    %c0_i32 = arith.constant 0 : i32
    %c0_i32_0 = arith.constant 0 : i32
    %c0_i32_1 = arith.constant 0 : i32
    return %c0_i32, %c0_i32_0 : i32, i32
  }
  func.func @transform_8(%arg0: i32) -> (i32, i32, i32) {
    %c0_i32 = arith.constant 0 : i32
    %c0_i32_0 = arith.constant 0 : i32
    %c0_i32_1 = arith.constant 0 : i32
    return %arg0, %c0_i32, %c0_i32_0 : i32, i32, i32
  }
}

</mosaic_0001>

<bundles_post_ra>
// kernel: tpu_custom_call.1
= control target key start
LH: loop header
LB: loop body
LE: loop exit
PB: predicated region body
PF: predicated region fallthrough
CT: control target
= control target key end

     0   :  { %s3058_s0 = inlined_call_operand.hbm [shape: f32[2,16,128], index: 0, kind: input, shape index: {}]   ;;  %s3059_s1 = inlined_call_operand.hbm [shape: bf16[128,384], index: 1, kind: input, shape index: {}]   ;;  %s3060_s2 = inlined_call_operand.hbm [shape: bf16[128,128], index: 2, kind: input, shape index: {}]   ;;  %s3061_s3 = inlined_call_operand.hbm [shape: bf16[128,256], index: 3, kind: input, shape index: {}]   ;;  %s3062_s4 = inlined_call_operand.hbm [shape: bf16[256,128], index: 4, kind: input, shape index: {}]   ;;  %s3063_s5 = inlined_call_operand.vmem [shape: f32[1,384], index: 5, kind: input, shape index: {}]   ;;  %s3064_s6 = inlined_call_operand.vmem [shape: f32[1,256], index: 6, kind: input, shape index: {}]   ;;  %s3065_s7 = inlined_call_operand.vmem [shape: f32[6,128], index: 7, kind: input, shape index: {}]   ;;  %s3066_s8 = inlined_call_operand.hbm [shape: f32[2,16,128], index: 8, kind: output, shape index: {}]  }
   0x1   :  { %3073 = sst [smem:[#allocation17_spill]] %s3059_s1 }
   0x2   :  { %13 = vsyncpa [#allocation3], 0 }
   0x3   :  { %15 = vsyncpa [#allocation3 + $0x1], 0 }
   0x4   :  { %16 = vsyncpa [#allocation6], 0 }
   0x5   :  { %17 = vsyncpa [#allocation9], 0 }
   0x6   :  { %18 = vsyncpa [#allocation4], 0 }
   0x7   :  { %20 = vsyncpa [#allocation4 + $0x1], 0  ;;  %s2609_s27 = smov 0   ;;  %s2611_s28 = smov 0  }
   0x8   :  { %s2613_s29 = smov 0   ;;  %s2615_s30 = smov 0  }
   0x9 LB: > { %s2630_s9 = sadd.s32 4294967295, %s2542_s30   ;;  %s1842_s10 = sadd.s32 4294967294, %s2542_s30   ;;  %s2542_s30 = sphi %s2615_s30, %s3098_s30   ;;  %s2538_s29 = sphi %s2613_s29, %s3097_s29   ;;  %s2534_s28 = sphi %s2611_s28, %s3096_s28   ;;  %s2530_s27 = sphi %s2609_s27, %s3095_s27  }
   0xa   : > { %p46_p0 = scmp.ne.s32.totalorder %s2534_s28, %s2530_s27  ;;  %p3067_p1 = scmp.eq.s32.totalorder %s2630_s9, 0 }
   0xb   : > { %p223_p3 = scmp.eq.s32.totalorder %s1842_s10, 1  ;;  %p1843_p5 = scmp.ge.s32.totalorder %s2542_s30, 1 }
   0xc   : > { %p2639_p4 = por %p3067_p1, %p46_p0  ;;  %p230_p7 = scmp.lt.s32.totalorder %s2542_s30, 3 }
   0xd   : > { %p2644_p6 = por %p223_p3, %p46_p0  ;;  %s2544_s14 = smov [#allocation5]  }
   0xe   : > { %s3074_s11 = scalar_select %p2639_p4, 1, 0 }
   0xf   : > { %s3075_s12 = scalar_select %p2644_p6, 1, 0 }
  0x10   : > { %p2649_p8 = pnand %p1843_p5, %p230_p7  ;;  %s242_s15 = sshll.u32 %s2544_s14, 4  ;;  %s2653_s15 = int_to_ptr.vmem [resolvable:$true] %s242_s15 }
  0x11   : > { %3076 = sst [smem:[#allocation16_spill]] %s3075_s12  ;;  %s2545_s17 = smov [#allocation8]  }
  0x12   : > { %s3077_s13 = scalar_select %p2649_p8, 1, 0 }
  0x13   : > { %p2102_p9 = pneg %p2649_p8  ;;  %s268_s18 = sshll.u32 %s2545_s17, 4  ;;  %s2664_s18 = int_to_ptr.vmem [resolvable:$true] %s268_s18 }
  0x14   : > { %s3079_s1 = sld [smem:[#allocation17_spill]] }
  0x15   : > { %p2660_p11 = pnand %p2102_p9, %p3067_p1 }
  0x17   : > { %p2674_p13 = pneg %p2660_p11 }
  0x1a   : > { %s2326_s21 = scalar_lea.hbm %s3079_s1, 3072 }
  0x1b   : > { %p2327_p12 = scmp.ne.s32.totalorder %s3079_s1, %s2326_s21  ;;  %p2333_p5 = scmp.lt.u32.totalorder %s2326_s21, %s3079_s1 }
  0x1d   : > { %p2329_p0 = pnand %p2674_p13, %p2327_p12 }
  0x1f   : > { %p2330_p3 = pneg %p2329_p0 }
  0x21   : > { %p2335_p7 = pnand %p2333_p5, %p2330_p3 }
  0x23   : > { %2338 = shalt.err (!%p2335_p7)
}
  0x24   : > { %s2339_s10 = scalar_lea.vmem %s2653_s15, 3072  ;;  %p2347_p2 = scmp.lt.s32.totalorder %s2653_s15, %s2653_s15 }
  0x25   : > { %p2340_p9 = scmp.ne.s32.totalorder %s2653_s15, %s2339_s10  ;;  %p2348_p6 = scmp.lt.s32.totalorder %s2339_s10, %s2339_s10 }
  0x27   : > { %p2342_p10 = pnand %p2340_p9, %p2674_p13  ;;  %p2349_p12 = por %p2348_p6, %p2347_p2 }
  0x29   : > { %p2343_p1 = pneg %p2342_p10 }
  0x2b   : > { %p2350_p0 = pnand %p2349_p12, %p2343_p1 }
  0x2d   : > { %2353 = shalt.err (!%p2350_p0)
}
  0x2e   : > { %s2546_s14 = smov 192   ;;  %s2547_s17 = smov 12  }
  0x2f   : > { %2105 = dma.hbm_to_vmem [thread:$0]  (!%p2660_p11), %s3079_s1, 3072, %s2653_s15, [#allocation6], %s2546_s14, %s2546_s14, %s2547_s17  }
  0x30   : > { %s2354_s23 = scalar_lea.hbm %s3061_s3, 2048 }
  0x31   : > { %p2355_p2 = scmp.ne.s32.totalorder %s3061_s3, %s2354_s23  ;;  %p2361_p10 = scmp.lt.u32.totalorder %s2354_s23, %s3061_s3 }
  0x33   : > { %p2357_p1 = pnand %p2355_p2, %p2674_p13 }
  0x35   : > { %p2358_p6 = pneg %p2357_p1 }
  0x37   : > { %p2363_p3 = pnand %p2361_p10, %p2358_p6 }
  0x39   : > { %2366 = shalt.err (!%p2363_p3)
}
  0x3a   : > { %s2367_s15 = scalar_lea.vmem %s2664_s18, 2048  ;;  %p2375_p12 = scmp.lt.s32.totalorder %s2664_s18, %s2664_s18 }
  0x3b   : > { %p2368_p5 = scmp.ne.s32.totalorder %s2664_s18, %s2367_s15  ;;  %p2376_p0 = scmp.lt.s32.totalorder %s2367_s15, %s2367_s15 }
  0x3d   : > { %p2370_p7 = pnand %p2368_p5, %p2674_p13  ;;  %p2377_p2 = por %p2376_p0, %p2375_p12 }
  0x3f   : > { %p2371_p9 = pneg %p2370_p7 }
  0x41   : > { %p2378_p1 = pnand %p2377_p2, %p2371_p9 }
  0x43   : > { %2381 = shalt.err (!%p2378_p1)
}
  0x44   : > { %s3071_s14 = smov 128   ;;  %s3072_s12 = smov 8  }
  0x45   : > { %2111 = dma.hbm_to_vmem [thread:$0]  (!%p2660_p11), %s3061_s3, 2048, %s2664_s18, [#allocation9], %s3071_s14, %s3071_s14, %s3072_s12  }
  0x46   : > { %s2550_s20 = smov [#allocation7]   ;;  %s2382_s25 = scalar_lea.hbm %s3060_s2, 1024 }
  0x47   : > { %s255_s21 = sshll.u32 %s2550_s20, 4  ;;  %p2383_p6 = scmp.ne.s32.totalorder %s3060_s2, %s2382_s25  ;;  %s256_s21 = int_to_ptr.vmem [resolvable:$true] %s255_s21 }
  0x48   : > { %p2389_p5 = scmp.lt.u32.totalorder %s2382_s25, %s3060_s2 }
  0x49   : > { %p2385_p10 = pnand %p2383_p6, %p2674_p13 }
  0x4b   : > { %p2386_p3 = pneg %p2385_p10 }
  0x4d   : > { %p2391_p7 = pnand %p2389_p5, %p2386_p3 }
  0x4f   : > { %2394 = shalt.err (!%p2391_p7)
}
  0x50   : > { %s2395_s18 = scalar_lea.vmem %s256_s21, 1024  ;;  %p2403_p2 = scmp.lt.s32.totalorder %s256_s21, %s256_s21 }
  0x51   : > { %p2396_p9 = scmp.ne.s32.totalorder %s256_s21, %s2395_s18  ;;  %p2404_p1 = scmp.lt.s32.totalorder %s2395_s18, %s2395_s18 }
  0x53   : > { %p2398_p12 = pnand %p2396_p9, %p2674_p13  ;;  %p2405_p4 = por %p2404_p1, %p2403_p2 }
  0x55   : > { %p2399_p0 = pneg %p2398_p12 }
  0x57   : > { %p2406_p8 = pnand %p2405_p4, %p2399_p0 }
  0x59   : > { %2409 = shalt.err (!%p2406_p8)
}
  0x5a   : > { %s2551_s17 = smov 64   ;;  %s2552_s19 = smov 4  }
  0x5b   : > { %2108 = dma.hbm_to_vmem [thread:$0]  (!%p2660_p11), %s3060_s2, 1024, %s256_s21, [#allocation6], %s2551_s17, %s2551_s17, %s2552_s19  }
  0x5c   : > { %s2553_s22 = smov [#allocation10]   ;;  %s2410_s10 = scalar_lea.hbm %s3062_s4, 2048 }
  0x5d   : > { %s281_s23 = sshll.u32 %s2553_s22, 4  ;;  %p2411_p4 = scmp.ne.s32.totalorder %s3062_s4, %s2410_s10  ;;  %s282_s23 = int_to_ptr.vmem [resolvable:$true] %s281_s23 }
  0x5e   : > { %p2417_p10 = scmp.lt.u32.totalorder %s2410_s10, %s3062_s4 }
  0x5f   : > { %p2413_p8 = pnand %p2411_p4, %p2674_p13 }
  0x61   : > { %p2414_p6 = pneg %p2413_p8 }
  0x63   : > { %p2419_p3 = pnand %p2417_p10, %p2414_p6 }
  0x65   : > { %2422 = shalt.err (!%p2419_p3)
}
  0x66   : > { %s2423_s21 = scalar_lea.vmem %s282_s23, 2048  ;;  %p2431_p12 = scmp.lt.s32.totalorder %s282_s23, %s282_s23 }
  0x67   : > { %p2424_p5 = scmp.ne.s32.totalorder %s282_s23, %s2423_s21  ;;  %p2432_p0 = scmp.lt.s32.totalorder %s2423_s21, %s2423_s21 }
  0x69   : > { %p2426_p7 = pnand %p2424_p5, %p2674_p13  ;;  %p2433_p2 = por %p2432_p0, %p2431_p12 }
  0x6b   : > { %p2427_p9 = pneg %p2426_p7 }
  0x6d   : > { %p2434_p1 = pnand %p2433_p2, %p2427_p9 }
  0x6f   : > { %2437 = shalt.err (!%p2434_p1)
}
  0x70   : > { %2114 = dma.hbm_to_vmem [thread:$0]  (!%p2660_p11), %s3062_s4, 2048, %s282_s23, [#allocation9], %s2551_s17, %s2551_s17, %s2552_s19  }
  0x71   : > { %s2758_s24 = sadd.s32 1, %s2542_s30   ;;  %s33_s14 = sadd.s32 1, %s2538_s29 }
  0x72   : > { %s30_s16 = ssub.s32 %s2542_s30, %s2758_s24  ;;  %p40_p13 = scmp.ne.s32.totalorder %s2538_s29, %s2534_s28 }
  0x73   : > { %p31_p4 = scmp.eq.s32.totalorder %s30_s16, 0  ;;  %p41_p8 = scmp.eq.s32.totalorder %s2542_s30, 0 }
  0x74   : > { %p3081_p6 = scmp.eq.s32.totalorder %s2630_s9, 1  ;;  %p2127_p3 = scmp.lt.s32.totalorder %s2542_s30, 2 }
  0x75   : > { %s2774_s22 = scalar_select %p31_p4, %s2538_s29, %s33_s14  }
  0x76   : > { %p2768_p10 = por %p3081_p6, %p40_p13  ;;  %p42_p5 = por %p41_p8, %p40_p13 }
  0x77   : > { %s304_s25 = sand.u32 1, %s2538_s29   ;;  %s1936_s17 = sshll.u32 %s2542_s30, 8 }
  0x78   : > { %s1849_s26 = sshll.u32 %s304_s25, 4  ;;  %s2781_s10 = scalar_lea.hbm %s3058_s0, %s1936_s17 }
  0x79   : > { %s308_s15 = scalar_lea.vmem [#allocation2], %s1849_s26  ;;  %p2785_p11 = pnand %p2127_p3, %p42_p5 }
  0x7a   : > { %s315_s18 = sshll.u32 %s308_s15, 4  ;;  %s2789_s1 = scalar_lea.sflag [#allocation3], %s304_s25  ;;  %s2783_s18 = int_to_ptr.vmem [resolvable:$true] %s315_s18 }
  0x7b   : > { %s2438_s20 = scalar_lea.hbm %s2781_s10, 256  ;;  %p2440_p9 = pneg %p2785_p11 }
  0x7c   : > { %p2439_p7 = scmp.ne.s32.totalorder %s2781_s10, %s2438_s20  ;;  %s2443_s26 = scalar_lea.hbm %s3058_s0, 512 }
  0x7d   : > { %p2444_p2 = scmp.lt.u32.totalorder %s2781_s10, %s3058_s0  ;;  %p2445_p1 = scmp.lt.u32.totalorder %s2443_s26, %s2438_s20 }
  0x7e   : > { %p2441_p12 = pnand %p2440_p9, %p2439_p7  ;;  %p2447_p4 = scmp.lt.u32.totalorder %s2438_s20, %s2781_s10 }
  0x7f   : > { %p2446_p13 = por %p2445_p1, %p2444_p2 }
  0x80   : > { %p2442_p0 = pneg %p2441_p12 }
  0x81   : > { %p2448_p8 = por %p2447_p4, %p2446_p13 }
  0x83   : > { %p2449_p6 = pnand %p2448_p8, %p2442_p0 }
  0x85   : > { %2452 = shalt.err (!%p2449_p6)
}
  0x86   : > { %s2453_s25 = scalar_lea.vmem %s2783_s18, 256  ;;  %s2554_s23 = smov [#allocation2]  }
  0x87   : > { %p2454_p3 = scmp.ne.s32.totalorder %s2783_s18, %s2453_s25  ;;  %s2458_s15 = sshll.u32 %s2554_s23, 4  ;;  %s2459_s15 = int_to_ptr.vmem [resolvable:$false] %s2458_s15 }
  0x88   : > { %s2460_s14 = scalar_lea.vmem %s2459_s15, 512  ;;  %p2461_p12 = scmp.lt.s32.totalorder %s2783_s18, %s2459_s15 }
  0x89   : > { %p2456_p5 = pnand %p2454_p3, %p2440_p9  ;;  %p2462_p2 = scmp.lt.s32.totalorder %s2460_s14, %s2453_s25 }
  0x8b   : > { %p2457_p7 = pneg %p2456_p5  ;;  %p2463_p1 = por %p2462_p2, %p2461_p12 }
  0x8d   : > { %p2464_p13 = pnand %p2463_p1, %p2457_p7 }
  0x8f   : > { %2467 = shalt.err (!%p2464_p13)
}
  0x90   : > { %s3084_s20 = smov 8   ;;  %s3085_s16 = smov 128  }
  0x91   : > { %2118 = dma.hbm_to_vmem [thread:$0]  (!%p2785_p11), %s2781_s10, 256, %s2783_s18, %s2789_s1, %s3085_s16, %s3085_s16, %s3084_s20  }
  0x92   : > { %p3086_p9 = scmp.ne.s32.totalorder %s3077_s13, 0 }
  0x93   : > { %s2823_s26 = sand.u32 (!%p3086_p9), 1, %s2534_s28   ;;  %p3087_p0 = scmp.ne.s32.totalorder (!%p3086_p9), %s3074_s11, 0 }
  0x94   : > { %327 = sbr.rel (%p3086_p9) target bundleno = 2476 (0x9ac), region = 52  ;;  %s1853_s17 = sshll.u32 (!%p3086_p9), %s2823_s26, 4 }
  0x95   : > { %s330_s19 = scalar_lea.sflag (!%p3086_p9), [#allocation3], %s2823_s26  ;;  %s333_s21 = scalar_lea.vmem (!%p3086_p9), [#allocation2], %s1853_s17 }
  0x9b   : > { %2513 = dma.done.wait (%p3087_p0), %s330_s19, 256  }
  0x9c   : > { %2515 = vsyncadd (%p3087_p0), %s330_s19, 4294967040  ;;  %p3088_p11 = scmp.eq.s32.totalorder %s2630_s9, 0 }
  0x9e   : > { %2517 = dma.done.wait (%p3088_p11), [#allocation6], 4096   ;;  %p3089_p4 = pmov %p3088_p11 }
  0xa0   : > { %2519 = vsyncadd (%p3089_p4), [#allocation6], 4294963200  ;;  %p3090_p8 = pmov %p3089_p4 }
  0xa1   : > { %p3091_p6 = pmov %p3089_p4 }
  0xa2   : > { %2521 = dma.done.wait (%p3090_p8), [#allocation9], 4096  }
  0xa3   : > { %2523 = vsyncadd (%p3091_p6), [#allocation9], 4294963200  ;;  %v2841_v0 = vld [vmem:[%s333_s21] sm:$0xff]  ;;  %v2843_v1 = vld [vmem:[%s333_s21 + $0x8] sm:$0xff]  ;;  %v2555_v7 = vmov 0.0   ;;  %v2556_v26 = vmov 0   ;;  %v414_v44 = vlaneseq }
  0xa4   : > { %386 = vadd.xlane.f32.xlu0 %v2841_v0  ;;  %v390_v2 = vmul.f32 %v2841_v0, %v2841_v0  ;;  %v391_v3 = vmul.f32 %v2843_v1, %v2843_v1  ;;  %v2198_v4 = vld [vmem:[#allocation5 + $0x4] ss:$12 sps:$4 sm:$0xff]   ;;  %v2200_v5 = vld [vmem:[#allocation5] ss:$12 sps:$4 sm:$0xff]   ;;  %v2201_v6 = vld [vmem:[#allocation5 + $0x8] ss:$12 sps:$4 sm:$0xff]   ;;  %1994 = vmatprep.subr.bf16.mxu1 %v2555_v7 }
  0xa5   : > { %604 = vmatprep.subr.bf16.mxu0 %v2198_v4  ;;  %1995 = vmatpush3.bf16.msra.mxu1 %v2201_v6  ;;  %v2202_v8 = vld [vmem:[#allocation5 + $0x1c] ss:$12 sps:$4 sm:$0xff]   ;;  %v2204_v9 = vld [vmem:[#allocation5 + $0x18] ss:$12 sps:$4 sm:$0xff]   ;;  %v2205_v10 = vld [vmem:[#allocation5 + $0x20] ss:$12 sps:$4 sm:$0xff]  }
  0xa6   : > { %392 = vadd.xlane.f32.xlu1 %v390_v2  ;;  %605 = vmatpush1.bf16.msra.mxu0 %v2200_v5  ;;  %v2206_v11 = vld [vmem:[#allocation5 + $0x34] ss:$12 sps:$4 sm:$0xff]   ;;  %v2208_v12 = vld [vmem:[#allocation5 + $0x30] ss:$12 sps:$4 sm:$0xff]   ;;  %v2209_v13 = vld [vmem:[#allocation5 + $0x38] ss:$12 sps:$4 sm:$0xff]  }
  0xa7   : > { %1996 = vmatprep.subr.bf16.mxu1 %v2555_v7  ;;  %606 = vmatprep.subr.bf16.mxu0 %v2202_v8  ;;  %v2210_v14 = vld [vmem:[#allocation5 + $0x4c] ss:$12 sps:$4 sm:$0xff]   ;;  %v2212_v15 = vld [vmem:[#allocation5 + $0x48] ss:$12 sps:$4 sm:$0xff]   ;;  %v2213_v16 = vld [vmem:[#allocation5 + $0x50] ss:$12 sps:$4 sm:$0xff]  }
  0xa8   : > { %388 = vadd.xlane.f32.xlu0 %v2843_v1  ;;  %v2214_v17 = vld [vmem:[#allocation5 + $0x64] ss:$12 sps:$4 sm:$0xff]   ;;  %v2216_v18 = vld [vmem:[#allocation5 + $0x60] ss:$12 sps:$4 sm:$0xff]   ;;  %v2217_v19 = vld [vmem:[#allocation5 + $0x68] ss:$12 sps:$4 sm:$0xff]   ;;  %636 = vmatprep.mubr.bf16.mxu0 %v2556_v26 }
  0xa9   : > { %1997 = vmatpush3.bf16.msra.mxu1 %v2205_v10  ;;  %v2218_v20 = vld [vmem:[#allocation5 + $0x7c] ss:$12 sps:$4 sm:$0xff]   ;;  %v2220_v21 = vld [vmem:[#allocation5 + $0x78] ss:$12 sps:$4 sm:$0xff]   ;;  %v2221_v22 = vld [vmem:[#allocation5 + $0x80] ss:$12 sps:$4 sm:$0xff]  }
  0xaa   : > { %394 = vadd.xlane.f32.xlu1 %v391_v3  ;;  %607 = vmatpush1.bf16.msra.mxu0 %v2204_v9  ;;  %v2222_v23 = vld [vmem:[#allocation5 + $0x94] ss:$12 sps:$4 sm:$0xff]   ;;  %v2224_v24 = vld [vmem:[#allocation5 + $0x90] ss:$12 sps:$4 sm:$0xff]   ;;  %v2225_v25 = vld [vmem:[#allocation5 + $0x98] ss:$12 sps:$4 sm:$0xff]  }
  0xab   : > { %1998 = vmatprep.subr.bf16.mxu1 %v2555_v7  ;;  %608 = vmatprep.subr.bf16.mxu0 %v2206_v11  ;;  %vm2557_vm0 = vmmov 0   ;;  %v2226_v27 = vld [vmem:[#allocation5 + $0xac] ss:$12 sps:$4 sm:$0xff]   ;;  %v2228_v28 = vld [vmem:[#allocation5 + $0xa8] ss:$12 sps:$4 sm:$0xff]   ;;  %v2864_v47 = vshrl.u32 %v414_v44, 7 }
  0xac   : > { %2010 = vmatprep.mubr.msk.bf16.mxu1 %vm2557_vm0, %v2555_v7  ;;  %v2229_v29 = vld [vmem:[#allocation5 + $0xb0] ss:$12 sps:$4 sm:$0xff]   ;;  %v2872_v49 = vld [vmem:[%s3065_s7] sm:$0x3f]  ;;  %vm715_vm1 = vcmask 261120   ;;  %s2558_s1 = smov 96  }
  0xad   : > { %1999 = vmatpush3.bf16.msra.mxu1 %v2209_v13  ;;  %v2867_v48 = vsub.s32 0, %v2864_v47  ;;  %v2878_v54 = vsub.s32 1, %v2864_v47  ;;  %v471_v2 = vsub.s32 2, %v2864_v47  ;;  %v459_v3 = vld [vmem:[%s3063_s5] sm:$0x7]  ;;  %s2559_s25 = smov 64  }
  0xae   : > { %609 = vmatpush1.bf16.msra.mxu0 %v2208_v12  ;;  %2000 = vmatprep.subr.bf16.mxu1 %v2555_v7  ;;  %s2560_s23 = smov 32   ;;  %vm912_vm2 = vcmask 130048   ;;  %vm1207_vm3 = vcmask 523264   ;;  %vm1210_vm4 = vcmask 785408   ;;  %s381_s20 = scalar_lea.vmem [#allocation11], %s1853_s17 }
  0xaf   : > { %610 = vmatprep.subr.bf16.mxu0 %v2210_v14  ;;  %v417_v53 = vrot.slane %v2872_v49, %v2867_v48  ;;  %v423_v59 = vrot.slane %v2872_v49, %v2878_v54  ;;  %v464_v4 = vrot.slane %v459_v3, %v2867_v48  ;;  %v472_v5 = vrot.slane %v459_v3, %v471_v2  ;;  %s1731_s16 = sshll.u32 %s381_s20, 4  ;;  %s1937_s19 = sshll.u32 %s2630_s9, 8  ;;  %s3008_s16 = int_to_ptr.vmem [resolvable:$true] %s1731_s16 }
  0xb0   : > { %v468_v9 = vrot.slane %v459_v3, %v2878_v54  ;;  %s3013_s13 = scalar_lea.hbm %s3066_s8, %s1937_s19  ;;  %s1718_s17 = scalar_lea.sflag [#allocation4], %s2823_s26 }
  0xb1   : > { %2001 = vmatpush3.bf16.msra.mxu1 %v2213_v16  ;;  %s2468_s10 = scalar_lea.vmem %s3008_s16, 256  ;;  %s2561_s9 = smov [#allocation11]  }
  0xb2   : > { %611 = vmatpush1.bf16.msra.mxu0 %v2212_v15  ;;  %2002 = vmatprep.subr.bf16.mxu1 %v2555_v7  ;;  %p2469_p3 = scmp.ne.s32.totalorder %s3008_s16, %s2468_s10  ;;  %s2472_s18 = sshll.u32 %s2561_s9, 4  ;;  %s2473_s18 = int_to_ptr.vmem [resolvable:$false] %s2472_s18 }
  0xb3   : > { %612 = vmatprep.subr.bf16.mxu0 %v2214_v17  ;;  %p2475_p12 = scmp.lt.s32.totalorder %s3008_s16, %s2473_s18 }
  0xb4   : > { %p2470_p5 = pnand %p2469_p3, %p2768_p10 }
  0xb5   : > { %2003 = vmatpush3.bf16.msra.mxu1 %v2217_v19 }
  0xb6   : > { %613 = vmatpush1.bf16.msra.mxu0 %v2216_v18  ;;  %2004 = vmatprep.subr.bf16.mxu1 %v2555_v7  ;;  %p2471_p7 = pneg %p2470_p5 }
  0xb7   : > { %614 = vmatprep.subr.bf16.mxu0 %v2218_v20 }
  0xb9   : > { %2005 = vmatpush3.bf16.msra.mxu1 %v2221_v22 }
  0xba   : > { %615 = vmatpush1.bf16.msra.mxu0 %v2220_v21  ;;  %2006 = vmatprep.subr.bf16.mxu1 %v2555_v7 }
  0xbb   : > { %616 = vmatprep.subr.bf16.mxu0 %v2222_v23 }
  0xbd   : > { %2007 = vmatpush3.bf16.msra.mxu1 %v2225_v25 }
  0xbe   : > { %617 = vmatpush1.bf16.msra.mxu0 %v2224_v24  ;;  %2008 = vmatprep.subr.bf16.mxu1 %v2555_v7 }
  0xbf   : > { %618 = vmatprep.subr.bf16.mxu0 %v2226_v27 }
  0xc1   : > { %2009 = vmatpush3.bf16.msra.mxu1 %v2229_v29 }
  0xc2   : > { %619 = vmatpush1.bf16.msra.mxu0 %v2228_v28  ;;  %2014 = vmatprep.subr.bf16.mxu1 %v2555_v7 }
  0xc3   : > { %2038 = vmatprep.subr.bf16.mxu0 %v2555_v7 }
 0x131   : > { %v387_v30 = vpop.xlane.xlu0 %386 }
 0x132   : > { %v396_v31 = vmul.f32 0.0078125, %v387_v30 }
 0x133   : > { %v393_v32 = vpop.xlane.xlu1 %392 }
 0x134   : > { %v400_v33 = vmul.f32 %v396_v31, %v396_v31  ;;  %v398_v34 = vmul.f32 0.0078125, %v393_v32  ;;  %v406_v50 = vsub.f32 %v2841_v0, %v396_v31 }
 0x135   : > { %v389_v35 = vpop.xlane.xlu0 %388 }
 0x136   : > { %v402_v36 = vsub.f32 %v398_v34, %v400_v33  ;;  %v397_v37 = vmul.f32 0.0078125, %v389_v35 }
 0x137   : > { %v395_v38 = vpop.xlane.xlu1 %394 }
 0x138   : > { %v404_v39 = vmax.f32 %v402_v36, 0.0  ;;  %v401_v40 = vmul.f32 %v397_v37, %v397_v37  ;;  %v399_v41 = vmul.f32 0.0078125, %v395_v38  ;;  %v407_v55 = vsub.f32 %v2843_v1, %v397_v37 }
 0x13a   : > { %v408_v42 = vadd.f32 1e-05, %v404_v39  ;;  %v403_v43 = vsub.f32 %v399_v41, %v401_v40 }
 0x13c   : > { %2278 = vrsqrt.f32 %v408_v42  ;;  %v405_v45 = vmax.f32 %v403_v43, 0.0 }
 0x13e   : > { %v409_v46 = vadd.f32 1e-05, %v405_v45 }
 0x140   : > { %2280 = vrsqrt.f32 %v409_v46 }
 0x146   : > { %v2279_v51 = vpop.eup %2278 }
 0x147   : > { %v412_v52 = vmul.f32 %v2279_v51, %v406_v50 }
 0x149   : > { %v418_v58 = vmul.f32 %v417_v53, %v412_v52 }
 0x14a   : > { %v2281_v56 = vpop.eup %2280 }
 0x14b   : > { %v413_v57 = vmul.f32 %v2281_v56, %v407_v55  ;;  %v424_v61 = vadd.f32 %v423_v59, %v418_v58 }
 0x14d   : > { %v419_v60 = vmul.f32 %v417_v53, %v413_v57 }
 0x14f   : > { %v425_v62 = vadd.f32 %v423_v59, %v419_v60 }
 0x151   : > { %v426_v63 = vpack.c.bf16 %v425_v62, %v424_v61 }
 0x153   : > { %637 = vmatmul.mubr.bf16.vlgmr.msra.gmra.mrb[0].mxu0 %v426_v63  ;;  %2011 = vmatmul.mubr.bf16.vlgmr.msra.gmra.mrb[0].mxu1 %v426_v63 }
 0x154   : > { %2016 = vmatprep.mubr.msk.bf16.mxu1 %vm2557_vm0, %v2555_v7  ;;  %2040 = vmatprep.mubr.msk.bf16.mxu0 %vm2557_vm0, %v2555_v7 }
 0x226   : > { %v638_v6 = vpop.f32.mrb[0].mxu0  ;;  %v681_v8 = vpop.f32.mrb[0].mxu1 }
 0x227   : > { %v640_v10 = vpop.f32.mrb[1].mxu0  ;;  %v2012_v11 = vpop.f32.mrb[1].mxu1  ;;  %v639_v14 = vadd.f32 %v638_v6, %v464_v4  ;;  %v682_v15 = vadd.f32 %v681_v8, %v472_v5 }
 0x228   : > { %v642_v12 = vpop.f32.mrb[2].mxu0  ;;  %v684_v13 = vpop.f32.mrb[2].mxu1  ;;  %v641_v20 = vadd.f32 %v640_v10, %v468_v9 }
 0x229   : > { %v643_v16 = vadd.f32 %v642_v12, %v464_v4  ;;  %v685_v17 = vadd.f32 %v684_v13, %v472_v5  ;;  %v644_v18 = vpop.f32.mrb[3].mxu0  ;;  %v2013_v19 = vpop.f32.mrb[3].mxu1 }
 0x22a   : > { %v645_v21 = vadd.f32 %v644_v18, %v468_v9 }
 0x22b   : > { %v688_v22 = vpack.c.bf16 %v643_v16, %v639_v14  ;;  %v2895_v23 = vpack.c.bf16 %v685_v17, %v682_v15 }
 0x22c   : > { %v689_v24 = vpack.c.bf16 %v645_v21, %v641_v20 }
 0x22d   : > { %2039 = vmatpush3.bf16.msra.mxu0 %v2895_v23  ;;  %692 = vrot.lane.b32.xlu1 %v688_v22, %s2558_s1 }
 0x22e   : > { %699 = vrot.lane.b32.xlu0 %v689_v24, %s2558_s1  ;;  %v720_v25 = vsel %vm715_vm1, %v689_v24, 0  ;;  %2050 = vmatprep.subr.bf16.mxu0 %v2555_v7 }
 0x22f   : > { %2015 = vmatpush3.bf16.xpose.msra.mxu1 %v720_v25 }
 0x230   : > { %2020 = vmatprep.subr.bf16.mxu1 %v2555_v7 }
 0x231   : > { %701 = vrot.lane.b32.xlu1 %v689_v24, %s2559_s25 }
 0x232   : > { %703 = vrot.lane.b32.xlu0 %v689_v24, %s2560_s23 }
 0x235   : > { %694 = vrot.lane.b32.xlu1 %v688_v22, %s2559_s25 }
 0x236   : > { %2017 = vmatmul.mubr.msk.bf16.vlgmr.msra.gmra.mrb[4].mxu1 %vm715_vm1, %v688_v22 }
 0x237   : > { %2022 = vmatprep.mubr.msk.bf16.mxu1 %vm2557_vm0, %v2555_v7 }
 0x239   : > { %696 = vrot.lane.b32.xlu1 %v688_v22, %s2560_s23 }
 0x29f   : > { %v693_v27 = vpop.permute.xlu1 %692 }
 0x2a0   : > { %v700_v28 = vpop.permute.xlu0 %699 }
 0x2a1   : > { %v767_v29 = vsel %vm715_vm1, %v700_v28, 0 }
 0x2a2   : > { %2021 = vmatpush3.bf16.xpose.msra.mxu1 %v767_v29 }
 0x2a3   : > { %2026 = vmatprep.subr.bf16.mxu1 %v2555_v7  ;;  %v702_v30 = vpop.permute.xlu1 %701 }
 0x2a4   : > { %v814_v31 = vsel %vm715_vm1, %v702_v30, 0  ;;  %v704_v32 = vpop.permute.xlu0 %703 }
 0x2a5   : > { %v861_v34 = vsel %vm715_vm1, %v704_v32, 0 }
 0x2a7   : > { %v695_v33 = vpop.permute.xlu1 %694 }
 0x2a9   : > { %2023 = vmatmul.mubr.msk.bf16.vlgmr.msra.gmra.mrb[8].mxu1 %vm715_vm1, %v693_v27 }
 0x2aa   : > { %2027 = vmatpush3.bf16.xpose.msra.mxu1 %v814_v31  ;;  %2028 = vmatprep.mubr.msk.bf16.mxu1 %vm2557_vm0, %v2555_v7 }
 0x2ab   : > { %2032 = vmatprep.subr.bf16.mxu1 %v2555_v7  ;;  %v697_v35 = vpop.permute.xlu1 %696 }
 0x2b1   : > { %2029 = vmatmul.mubr.msk.bf16.vlgmr.msra.gmra.mrb[12].mxu1 %vm715_vm1, %v695_v33 }
 0x2b2   : > { %2033 = vmatpush3.bf16.xpose.msra.mxu1 %v861_v34  ;;  %2034 = vmatprep.mubr.msk.bf16.mxu1 %vm2557_vm0, %v2555_v7 }
 0x2b3   : > { %2044 = vmatprep.subr.bf16.mxu1 %v2555_v7 }
 0x2b9   : > { %2035 = vmatmul.mubr.msk.bf16.vlgmr.msra.gmra.mrb[16].mxu1 %vm715_vm1, %v697_v35 }
 0x2ba   : > { %2046 = vmatprep.mubr.msk.bf16.mxu1 %vm2557_vm0, %v2555_v7 }
 0x309   : > { %v756_v36 = vpop.f32.mrb[4].mxu1 }
 0x30a   : > { %v904_v37 = vmul.f32 0.17677669, %v756_v36  ;;  %v2018_v38 = vpop.f32.mrb[5].mxu1 }
 0x30b   : > { %v759_v39 = vpop.f32.mrb[6].mxu1 }
 0x30c   : > { %v905_v40 = vmul.f32 0.17677669, %v759_v39  ;;  %v2019_v41 = vpop.f32.mrb[7].mxu1  ;;  %v913_v42 = vsel %vm912_vm2, %v904_v37, -inf }
 0x30d   : > { %914 = vmax.xlane.f32.xlu0 %v913_v42 }
 0x30e   : > { %v916_v43 = vsel %vm912_vm2, %v905_v40, -inf }
 0x30f   : > { %917 = vmax.xlane.f32.xlu1 %v916_v43 }
 0x37c   : > { %v803_v44 = vpop.f32.mrb[8].mxu1 }
 0x37d   : > { %v906_v45 = vmul.f32 0.17677669, %v803_v44  ;;  %v2024_v46 = vpop.f32.mrb[9].mxu1 }
 0x37e   : > { %v806_v50 = vpop.f32.mrb[10].mxu1 }
 0x37f   : > { %v907_v51 = vmul.f32 0.17677669, %v806_v50  ;;  %v2025_v52 = vpop.f32.mrb[11].mxu1  ;;  %v919_v53 = vsel %vm912_vm2, %v906_v45, -inf }
 0x380   : > { %920 = vmax.xlane.f32.xlu0 %v919_v53 }
 0x381   : > { %v922_v55 = vsel %vm912_vm2, %v907_v51, -inf }
 0x384   : > { %923 = vmax.xlane.f32.xlu0 %v922_v55  ;;  %v850_v56 = vpop.f32.mrb[12].mxu1 }
 0x385   : > { %v908_v57 = vmul.f32 0.17677669, %v850_v56  ;;  %v2030_v58 = vpop.f32.mrb[13].mxu1 }
 0x386   : > { %v853_v59 = vpop.f32.mrb[14].mxu1 }
 0x387   : > { %v909_v60 = vmul.f32 0.17677669, %v853_v59  ;;  %v2031_v61 = vpop.f32.mrb[15].mxu1  ;;  %v925_v62 = vsel %vm912_vm2, %v908_v57, -inf }
 0x388   : > { %926 = vmax.xlane.f32.xlu0 %v925_v62 }
 0x389   : > { %v928_v63 = vsel %vm912_vm2, %v909_v60, -inf }
 0x38a   : > { %929 = vmax.xlane.f32.xlu1 %v928_v63 }
 0x38c   : > { %v897_v3 = vpop.f32.mrb[16].mxu1 }
 0x38d   : > { %v910_v4 = vmul.f32 0.17677669, %v897_v3  ;;  %v2036_v5 = vpop.f32.mrb[17].mxu1 }
 0x38e   : > { %v900_v6 = vpop.f32.mrb[18].mxu1 }
 0x38f   : > { %v2931_v8 = vmul.f32 0.17677669, %v900_v6  ;;  %v2037_v9 = vpop.f32.mrb[19].mxu1  ;;  %v931_v10 = vsel %vm912_vm2, %v910_v4, -inf }
 0x390   : > { %932 = vmax.xlane.f32.xlu0 %v931_v10 }
 0x391   : > { %v934_v11 = vsel %vm912_vm2, %v2931_v8, -inf }
 0x392   : > { %935 = vmax.xlane.f32.xlu1 %v934_v11 }
 0x39a   : > { %v915_v12 = vpop.xlane.xlu0 %914 }
 0x39b   : > { %v937_v13 = vsub.f32 %v904_v37, %v915_v12 }
 0x39c   : > { %v918_v14 = vpop.xlane.xlu1 %917 }
 0x39d   : > { %v945_v15 = vmul.f32 1.442695, %v937_v13  ;;  %v938_v16 = vsub.f32 %v905_v40, %v918_v14 }
 0x39f   : > { %2282 = vpow2.f32 %v945_v15  ;;  %v947_v17 = vmul.f32 1.442695, %v938_v16 }
 0x3a1   : > { %2284 = vpow2.f32 %v947_v17 }
 0x3a9   : > { %v2283_v18 = vpop.eup %2282 }
 0x3aa   : > { %v961_v19 = vsel %vm912_vm2, %v2283_v18, 0.0 }
 0x3ab   : > { %v2285_v20 = vpop.eup %2284  ;;  %962 = vadd.xlane.f32.xlu0 %v961_v19 }
 0x3ac   : > { %v964_v21 = vsel %vm912_vm2, %v2285_v20, 0.0 }
 0x3ad   : > { %965 = vadd.xlane.f32.xlu1 %v964_v21 }
 0x40d   : > { %v921_v22 = vpop.xlane.xlu0 %920 }
 0x40e   : > { %v939_v24 = vsub.f32 %v906_v45, %v921_v22 }
 0x410   : > { %v949_v25 = vmul.f32 1.442695, %v939_v24 }
 0x411   : > { %v924_v27 = vpop.xlane.xlu0 %923 }
 0x412   : > { %2286 = vpow2.f32 %v949_v25  ;;  %v940_v28 = vsub.f32 %v907_v51, %v924_v27 }
 0x414   : > { %v951_v29 = vmul.f32 1.442695, %v940_v28 }
 0x415   : > { %v927_v30 = vpop.xlane.xlu0 %926 }
 0x416   : > { %2288 = vpow2.f32 %v951_v29  ;;  %v941_v31 = vsub.f32 %v908_v57, %v927_v30 }
 0x417   : > { %v930_v32 = vpop.xlane.xlu1 %929 }
 0x418   : > { %v953_v33 = vmul.f32 1.442695, %v941_v31  ;;  %v942_v34 = vsub.f32 %v909_v60, %v930_v32 }
 0x41a   : > { %2290 = vpow2.f32 %v953_v33  ;;  %v955_v35 = vmul.f32 1.442695, %v942_v34  ;;  %v2230_v34 = vld [vmem:[#allocation7] sm:$0xff]  }
 0x41c   : > { %v2287_v36 = vpop.eup %2286  ;;  %2292 = vpow2.f32 %v955_v35  ;;  %v2231_v35 = vld [vmem:[#allocation7 + $0x8] sm:$0xff]  }
 0x41d   : > { %v933_v37 = vpop.xlane.xlu0 %932  ;;  %v967_v38 = vsel %vm912_vm2, %v2287_v36, 0.0 }
 0x41e   : > { %v943_v39 = vsub.f32 %v910_v4, %v933_v37  ;;  %968 = vadd.xlane.f32.xlu0 %v967_v38 }
 0x41f   : > { %v936_v52 = vpop.xlane.xlu1 %935 }
 0x420   : > { %v2289_v40 = vpop.eup %2288  ;;  %v957_v41 = vmul.f32 1.442695, %v943_v39  ;;  %v944_v60 = vsub.f32 %v2931_v8, %v936_v52  ;;  %v2236_v52 = vld [vmem:[#allocation7 + $0x30] sm:$0xff]  }
 0x421   : > { %v970_v42 = vsel %vm912_vm2, %v2289_v40, 0.0 }
 0x422   : > { %2294 = vpow2.f32 %v957_v41  ;;  %971 = vadd.xlane.f32.xlu1 %v970_v42  ;;  %v959_v62 = vmul.f32 1.442695, %v944_v60 }
 0x424   : > { %v2291_v43 = vpop.eup %2290 }
 0x425   : > { %v973_v44 = vsel %vm912_vm2, %v2291_v43, 0.0 }
 0x426   : > { %v2293_v45 = vpop.eup %2292  ;;  %974 = vadd.xlane.f32.xlu0 %v973_v44 }
 0x427   : > { %v976_v46 = vsel %vm912_vm2, %v2293_v45, 0.0 }
 0x428   : > { %977 = vadd.xlane.f32.xlu1 %v976_v46  ;;  %v2233_v46 = vld [vmem:[#allocation7 + $0x18] sm:$0xff]  }
 0x42c   : > { %v2295_v50 = vpop.eup %2294 }
 0x42d   : > { %v979_v51 = vsel %vm912_vm2, %v2295_v50, 0.0 }
 0x42e   : > { %980 = vadd.xlane.f32.xlu0 %v979_v51  ;;  %v2235_v51 = vld [vmem:[#allocation7 + $0x28] sm:$0xff]  }
 0x438   : > { %v963_v53 = vpop.xlane.xlu0 %962 }
 0x439   : > { %2296 = vrcp.f32 %v963_v53  ;;  %709 = vrot.lane.b32.xlu1 %v2895_v23, %s2559_s25  ;;  %v2237_v53 = vld [vmem:[#allocation7 + $0x38] sm:$0xff]  }
 0x43a   : > { %v966_v55 = vpop.xlane.xlu1 %965 }
 0x43b   : > { %2298 = vrcp.f32 %v966_v55 }
 0x43c   : > { %2300 = vpow2.f32 %v959_v62 }
 0x443   : > { %v2297_v56 = vpop.eup %2296 }
 0x444   : > { %706 = vrot.lane.b32.xlu0 %v2895_v23, %s2558_s1  ;;  %v993_v58 = vmul.f32 %v2297_v56, %v2283_v18 }
 0x445   : > { %v2299_v57 = vpop.eup %2298 }
 0x446   : > { %v994_v59 = vmul.f32 %v2299_v57, %v2285_v20  ;;  %v2301_v63 = vpop.eup %2300 }
 0x447   : > { %v982_v3 = vsel %vm912_vm2, %v2301_v63, 0.0 }
 0x448   : > { %v1001_v61 = vpack.c.bf16 %v994_v59, %v993_v58 }
 0x44a   : > { %2041 = vmatmul.mubr.msk.bf16.vlgmr.msra.gmra.mrb[4].mxu0 %vm912_vm2, %v1001_v61 }
 0x44b   : > { %2052 = vmatprep.mubr.msk.bf16.mxu0 %vm2557_vm0, %v2555_v7 }
 0x45d   : > { %983 = vadd.xlane.f32.xlu1 %v982_v3 }
 0x46e   : > { %712 = vrot.lane.b32.xlu1 %v2895_v23, %s2560_s23 }
 0x4ab   : > { %v969_v4 = vpop.xlane.xlu0 %968 }
 0x4af   : > { %v972_v5 = vpop.xlane.xlu1 %971 }
 0x4b0   : > { %2302 = vrcp.f32 %v972_v5 }
 0x4b1   : > { %2304 = vrcp.f32 %v969_v4 }
 0x4b3   : > { %v975_v6 = vpop.xlane.xlu0 %974 }
 0x4b4   : > { %2306 = vrcp.f32 %v975_v6 }
 0x4b5   : > { %v978_v8 = vpop.xlane.xlu1 %977 }
 0x4b6   : > { %2308 = vrcp.f32 %v978_v8 }
 0x4b9   : > { %v710_v9 = vpop.permute.xlu1 %709 }
 0x4ba   : > { %v2303_v10 = vpop.eup %2302  ;;  %2051 = vmatpush3.bf16.msra.mxu0 %v710_v9 }
 0x4bb   : > { %v981_v11 = vpop.xlane.xlu0 %980  ;;  %2062 = vmatprep.subr.bf16.mxu0 %v2555_v7  ;;  %v2305_v12 = vpop.eup %2304  ;;  %v996_v13 = vmul.f32 %v2303_v10, %v2289_v40  ;;  %v2232_v40 = vld [vmem:[#allocation7 + $0x10] sm:$0xff]  }
 0x4bc   : > { %v995_v15 = vmul.f32 %v2305_v12, %v2287_v36  ;;  %2310 = vrcp.f32 %v981_v11 }
 0x4be   : > { %v2307_v14 = vpop.eup %2306  ;;  %v1002_v19 = vpack.c.bf16 %v996_v13, %v995_v15  ;;  %v1232_v15 = vsub.s32 4, %v2864_v47 }
 0x4bf   : > { %v707_v16 = vpop.permute.xlu0 %706  ;;  %v997_v17 = vmul.f32 %v2307_v14, %v2291_v43 }
 0x4c0   : > { %v2309_v23 = vpop.eup %2308  ;;  %2045 = vmatpush3.bf16.msra.mxu1 %v707_v16  ;;  %v1233_v16 = vrot.slane %v2872_v49, %v1232_v15 }
 0x4c1   : > { %v998_v18 = vmul.f32 %v2309_v23, %v2293_v45  ;;  %2056 = vmatprep.subr.bf16.mxu1 %v2555_v7 }
 0x4c3   : > { %2047 = vmatmul.mubr.msk.bf16.vlgmr.msra.gmra.mrb[20].mxu1 %vm912_vm2, %v1002_v19  ;;  %v1003_v20 = vpack.c.bf16 %v998_v18, %v997_v17 }
 0x4c4   : > { %2058 = vmatprep.mubr.msk.bf16.mxu1 %vm2557_vm0, %v2555_v7 }
 0x4c5   : > { %2053 = vmatmul.mubr.msk.bf16.vlgmr.msra.gmra.mrb[8].mxu0 %vm912_vm2, %v1003_v20 }
 0x4c6   : > { %2078 = vmatprep.mubr.msk.bf16.mxu0 %vm2557_vm0, %v2555_v7  ;;  %v2311_v24 = vpop.eup %2310  ;;  %2063 = vmatpush3.bf16.msra.mxu0 %v2230_v34  ;;  %v2250_v34 = vld [vmem:[#allocation8 + $0x40] ss:$8 sps:$4 sm:$0xff]  }
 0x4c7   : > { %v999_v27 = vmul.f32 %v2311_v24, %v2295_v50  ;;  %2064 = vmatprep.subr.bf16.mxu0 %v2555_v7  ;;  %v2234_v50 = vld [vmem:[#allocation7 + $0x20] sm:$0xff]  }
 0x4ca   : > { %2065 = vmatpush3.bf16.msra.mxu0 %v2231_v35  ;;  %v2252_v35 = vld [vmem:[#allocation8 + $0x44] ss:$8 sps:$4 sm:$0xff]  }
 0x4cb   : > { %2066 = vmatprep.subr.bf16.mxu0 %v2555_v7 }
 0x4ce   : > { %2067 = vmatpush3.bf16.msra.mxu0 %v2232_v40  ;;  %v2261_v40 = vld [vmem:[#allocation8 + $0x74] ss:$8 sps:$4 sm:$0xff]  }
 0x4cf   : > { %2068 = vmatprep.subr.bf16.mxu0 %v2555_v7 }
 0x4d2   : > { %2069 = vmatpush3.bf16.msra.mxu0 %v2233_v46 }
 0x4d3   : > { %2070 = vmatprep.subr.bf16.mxu0 %v2555_v7 }
 0x4d6   : > { %2071 = vmatpush3.bf16.msra.mxu0 %v2234_v50 }
 0x4d7   : > { %2072 = vmatprep.subr.bf16.mxu0 %v2555_v7 }
 0x4da   : > { %2073 = vmatpush3.bf16.msra.mxu0 %v2235_v51 }
 0x4db   : > { %2074 = vmatprep.subr.bf16.mxu0 %v2555_v7 }
 0x4de   : > { %2075 = vmatpush3.bf16.msra.mxu0 %v2236_v52 }
 0x4df   : > { %2076 = vmatprep.subr.bf16.mxu0 %v2555_v7 }
 0x4e2   : > { %2077 = vmatpush3.bf16.msra.mxu0 %v2237_v53 }
 0x4ea   : > { %v984_v21 = vpop.xlane.xlu1 %983 }
 0x4eb   : > { %2312 = vrcp.f32 %v984_v21 }
 0x4ee   : > { %v713_v22 = vpop.permute.xlu1 %712 }
 0x4ef   : > { %2057 = vmatpush3.bf16.msra.mxu1 %v713_v22 }
 0x4f5   : > { %v2313_v25 = vpop.eup %2312 }
 0x4f6   : > { %v1000_v28 = vmul.f32 %v2313_v25, %v2301_v63 }
 0x4f8   : > { %v1004_v29 = vpack.c.bf16 %v1000_v28, %v999_v27  ;;  %v2240_v28 = vld [vmem:[#allocation8 + $0x4] ss:$8 sps:$4 sm:$0xff]  }
 0x4f9   : > { %1474 = vmatprep.subr.bf16.mxu1 %v2240_v28  ;;  %v2274_v28 = vld [vmem:[#allocation10 + $0x70] sm:$0xff]  }
 0x4fa   : > { %2059 = vmatmul.mubr.msk.bf16.vlgmr.msra.gmra.mrb[24].mxu1 %vm912_vm2, %v1004_v29  ;;  %v2243_v29 = vld [vmem:[#allocation8 + $0x14] ss:$8 sps:$4 sm:$0xff]  }
 0x4fb   : > { %1506 = vmatprep.mubr.bf16.mxu1 %v2556_v26 }
 0x51d   : > { %v1042_v30 = vpop.f32.mrb[4].mxu0 }
 0x51e   : > { %v2042_v31 = vpop.f32.mrb[5].mxu0 }
 0x51f   : > { %v1045_v32 = vpop.f32.mrb[6].mxu0  ;;  %v2244_v31 = vld [vmem:[#allocation8 + $0x20] ss:$8 sps:$4 sm:$0xff]  }
 0x520   : > { %v2043_v33 = vpop.f32.mrb[7].mxu0 }
 0x521   : > { %v2247_v33 = vld [vmem:[#allocation8 + $0x30] ss:$8 sps:$4 sm:$0xff]  }
 0x596   : > { %v1086_v36 = vpop.f32.mrb[20].mxu1 }
 0x597   : > { %v2048_v37 = vpop.f32.mrb[21].mxu1 }
 0x598   : > { %v1089_v38 = vpop.f32.mrb[22].mxu1  ;;  %v1130_v39 = vpop.f32.mrb[8].mxu0  ;;  %v2253_v37 = vld [vmem:[#allocation8 + $0x50] ss:$8 sps:$4 sm:$0xff]  }
 0x599   : > { %v2183_v41 = vpack.i.bf16 %v1089_v38, %v1086_v36  ;;  %v2049_v42 = vpop.f32.mrb[23].mxu1  ;;  %v2054_v43 = vpop.f32.mrb[9].mxu0  ;;  %v2255_v36 = vld [vmem:[#allocation8 + $0x54] ss:$8 sps:$4 sm:$0xff]   ;;  %v2258_v38 = vld [vmem:[#allocation8 + $0x64] ss:$8 sps:$4 sm:$0xff]  }
 0x59a   : > { %v1133_v26 = vpop.f32.mrb[10].mxu0  ;;  %v2262_v42 = vld [vmem:[#allocation10 + $0x40] sm:$0xff]  }
 0x59b   : > { %v2188_v44 = vpack.i.bf16 %v1133_v26, %v1130_v39  ;;  %v2055_v45 = vpop.f32.mrb[11].mxu0  ;;  %2184 = vrot.lane.b32.xlu1 %v2183_v41, %s2560_s23  ;;  %v2256_v39 = vld [vmem:[#allocation8 + $0x60] ss:$8 sps:$4 sm:$0xff]   ;;  %v2259_v41 = vld [vmem:[#allocation8 + $0x70] ss:$8 sps:$4 sm:$0xff]   ;;  %1972 = vmatprep.subr.bf16.mxu0 %v2262_v42 }
 0x59c   : > { %v2263_v43 = vld [vmem:[#allocation10] sm:$0xff]   ;;  %v2264_v26 = vld [vmem:[#allocation10 + $0x48] sm:$0xff]  }
 0x59d   : > { %2189 = vrot.lane.b32.xlu0 %v2188_v44, %s2559_s25  ;;  %v2265_v44 = vld [vmem:[#allocation10 + $0x8] sm:$0xff]  }
 0x5cd   : > { %v1174_v55 = vpop.f32.mrb[24].mxu1 }
 0x5ce   : > { %v2060_v56 = vpop.f32.mrb[25].mxu1 }
 0x5cf   : > { %v1177_v57 = vpop.f32.mrb[26].mxu1 }
 0x5d0   : > { %v2193_v58 = vpack.i.bf16 %v1177_v57, %v1174_v55  ;;  %v2061_v59 = vpop.f32.mrb[27].mxu1 }
 0x5d2   : > { %2194 = vrot.lane.b32.xlu1 %v2193_v58, %s2558_s1  ;;  %s2474_s1 = scalar_lea.vmem %s2473_s18, 512 }
 0x5d3   : > { %p2476_p2 = scmp.lt.s32.totalorder %s2474_s1, %s2468_s10 }
 0x5d5   : > { %p2477_p1 = por %p2476_p2, %p2475_p12 }
 0x5d7   : > { %p2478_p13 = pnand %p2477_p1, %p2471_p7 }
 0x60d   : > { %v2185_v60 = vpop.permute.xlu1 %2184 }
 0x60e   : > { %v2187_v61 = vunpack.i.h.bf16 %v2185_v60  ;;  %v2186_v62 = vunpack.i.l.bf16 %v2185_v60 }
 0x60f   : > { %v2190_v63 = vpop.permute.xlu0 %2189 }
 0x610   : > { %v2192_v3 = vunpack.i.h.bf16 %v2190_v63  ;;  %v2191_v4 = vunpack.i.l.bf16 %v2190_v63  ;;  %v1206_v5 = vsel %vm715_vm1, %v1045_v32, %v2187_v61  ;;  %v1205_v6 = vsel %vm715_vm1, %v1042_v30, %v2186_v62  ;;  %v2241_v30 = vld [vmem:[#allocation8 + $0x10] ss:$8 sps:$4 sm:$0xff]   ;;  %v2249_v32 = vld [vmem:[#allocation8 + $0x34] ss:$8 sps:$4 sm:$0xff]  }
 0x612   : > { %v1208_v10 = vsel %vm1207_vm3, %v1205_v6, %v2191_v4  ;;  %v1209_v11 = vsel %vm1207_vm3, %v1206_v5, %v2192_v3  ;;  %v1356_v6 = vrot.slane %v2872_v49, %v471_v2  ;;  %v2268_v2 = vld [vmem:[#allocation10 + $0x58] sm:$0xff]  }
 0x644   : > { %v2195_v7 = vpop.permute.xlu1 %2194 }
 0x645   : > { %v2197_v8 = vunpack.i.h.bf16 %v2195_v7  ;;  %v2196_v9 = vunpack.i.l.bf16 %v2195_v7 }
 0x647   : > { %v1212_v12 = vsel %vm1210_vm4, %v1209_v11, %v2197_v8  ;;  %v1211_v13 = vsel %vm1210_vm4, %v1208_v10, %v2196_v9  ;;  %v1361_v8 = vsub.s32 3, %v2864_v47 }
 0x648   : > { %v1213_v14 = vpack.c.bf16 %v1212_v12, %v1211_v13 }
 0x649   : > { %v1362_v13 = vrot.slane %v2872_v49, %v1361_v8 }
 0x64a   : > { %2079 = vmatmul.mubr.bf16.vlgmr.msra.gmra.mrb[12].mxu0 %v1213_v14 }
 0x64b   : > { %1973 = vmatpush3.bf16.msra.mxu0 %v2263_v43 }
 0x64c   : > { %1974 = vmatprep.subr.bf16.mxu0 %v2264_v26 }
 0x64f   : > { %1975 = vmatpush3.bf16.msra.mxu0 %v2265_v44 }
 0x71d   : > { %v1316_v23 = vpop.f32.mrb[12].mxu0 }
 0x71e   : > { %v1317_v17 = vadd.f32 %v1316_v23, %v1233_v16  ;;  %v2080_v18 = vpop.f32.mrb[13].mxu0 }
 0x71f   : > { %v1319_v19 = vpop.f32.mrb[14].mxu0  ;;  %v2267_v18 = vld [vmem:[#allocation10 + $0x10] sm:$0xff]  }
 0x720   : > { %v2979_v20 = vadd.f32 %v1317_v17, %v2841_v0  ;;  %v1320_v21 = vadd.f32 %v1319_v19, %v1233_v16  ;;  %v2081_v22 = vpop.f32.mrb[15].mxu0  ;;  %v2238_v0 = vld [vmem:[#allocation8] ss:$8 sps:$4 sm:$0xff]   ;;  %v2266_v17 = vld [vmem:[#allocation10 + $0x50] sm:$0xff]   ;;  %v2269_v19 = vld [vmem:[#allocation10 + $0x18] sm:$0xff]  }
 0x721   : > { %1475 = vmatpush1.bf16.msra.mxu1 %v2238_v0  ;;  %1976 = vmatprep.subr.bf16.mxu0 %v2266_v17  ;;  %v2271_v22 = vld [vmem:[#allocation10 + $0x20] sm:$0xff]   ;;  %v2275_v0 = vld [vmem:[#allocation10 + $0x30] sm:$0xff]  }
 0x722   : > { %v2982_v24 = vadd.f32 %v1320_v21, %v2843_v1  ;;  %1325 = vadd.xlane.f32.xlu0 %v2979_v20  ;;  %v1329_v25 = vmul.f32 %v2979_v20, %v2979_v20  ;;  %1476 = vmatprep.subr.bf16.mxu1 %v2243_v29  ;;  %v2246_v1 = vld [vmem:[#allocation8 + $0x24] ss:$8 sps:$4 sm:$0xff]   ;;  %v2276_v29 = vld [vmem:[#allocation10 + $0x78] sm:$0xff]  }
 0x723   : > { %1977 = vmatpush3.bf16.msra.mxu0 %v2267_v18  ;;  %v2270_v21 = vld [vmem:[#allocation10 + $0x60] sm:$0xff]  }
 0x724   : > { %1327 = vadd.xlane.f32.xlu1 %v2982_v24  ;;  %v1330_v27 = vmul.f32 %v2982_v24, %v2982_v24  ;;  %1978 = vmatprep.subr.bf16.mxu0 %v2268_v2 }
 0x725   : > { %1477 = vmatpush1.bf16.msra.mxu1 %v2241_v30  ;;  %v2277_v30 = vld [vmem:[#allocation10 + $0x38] sm:$0xff]  }
 0x726   : > { %1331 = vadd.xlane.f32.xlu0 %v1329_v25  ;;  %1478 = vmatprep.subr.bf16.mxu1 %v2246_v1  ;;  %v2272_v25 = vld [vmem:[#allocation10 + $0x68] sm:$0xff]   ;;  %v1382_v1 = vld [vmem:[%s3064_s6] sm:$0x3] }
 0x727   : > { %1979 = vmatpush3.bf16.msra.mxu0 %v2269_v19 }
 0x728   : > { %1980 = vmatprep.subr.bf16.mxu0 %v2270_v21 }
 0x729   : > { %1479 = vmatpush1.bf16.msra.mxu1 %v2244_v31  ;;  %v1387_v31 = vrot.slane %v1382_v1, %v2867_v48 }
 0x72a   : > { %1333 = vadd.xlane.f32.xlu0 %v1330_v27  ;;  %1480 = vmatprep.subr.bf16.mxu1 %v2249_v32  ;;  %v2273_v27 = vld [vmem:[#allocation10 + $0x28] sm:$0xff]   ;;  %v1391_v32 = vrot.slane %v1382_v1, %v2878_v54 }
 0x72b   : > { %1981 = vmatpush3.bf16.msra.mxu0 %v2271_v22 }
 0x72c   : > { %1982 = vmatprep.subr.bf16.mxu0 %v2272_v25 }
 0x72d   : > { %1481 = vmatpush1.bf16.msra.mxu1 %v2247_v33 }
 0x72e   : > { %1482 = vmatprep.subr.bf16.mxu1 %v2252_v35 }
 0x72f   : > { %1983 = vmatpush3.bf16.msra.mxu0 %v2273_v27 }
 0x730   : > { %1984 = vmatprep.subr.bf16.mxu0 %v2274_v28 }
 0x731   : > { %1483 = vmatpush1.bf16.msra.mxu1 %v2250_v34 }
 0x732   : > { %1484 = vmatprep.subr.bf16.mxu1 %v2255_v36 }
 0x733   : > { %1985 = vmatpush3.bf16.msra.mxu0 %v2275_v0 }
 0x734   : > { %1986 = vmatprep.subr.bf16.mxu0 %v2276_v29 }
 0x735   : > { %1485 = vmatpush1.bf16.msra.mxu1 %v2253_v37 }
 0x736   : > { %1486 = vmatprep.subr.bf16.mxu1 %v2258_v38 }
 0x737   : > { %1987 = vmatpush3.bf16.msra.mxu0 %v2277_v30 }
 0x739   : > { %1487 = vmatpush1.bf16.msra.mxu1 %v2256_v39 }
 0x73a   : > { %1488 = vmatprep.subr.bf16.mxu1 %v2261_v40 }
 0x73d   : > { %1489 = vmatpush1.bf16.msra.mxu1 %v2259_v41 }
 0x7af   : > { %v1326_v45 = vpop.xlane.xlu0 %1325 }
 0x7b0   : > { %v1335_v46 = vmul.f32 0.0078125, %v1326_v45 }
 0x7b1   : > { %v1328_v50 = vpop.xlane.xlu1 %1327 }
 0x7b2   : > { %v1339_v52 = vmul.f32 %v1335_v46, %v1335_v46  ;;  %v1336_v53 = vmul.f32 0.0078125, %v1328_v50  ;;  %v1345_v4 = vsub.f32 %v2979_v20, %v1335_v46 }
 0x7b3   : > { %v1332_v51 = vpop.xlane.xlu0 %1331 }
 0x7b4   : > { %v1337_v55 = vmul.f32 0.0078125, %v1332_v51  ;;  %v1340_v58 = vmul.f32 %v1336_v53, %v1336_v53  ;;  %v1346_v9 = vsub.f32 %v2982_v24, %v1336_v53 }
 0x7b6   : > { %v1341_v56 = vsub.f32 %v1337_v55, %v1339_v52 }
 0x7b7   : > { %v1334_v57 = vpop.xlane.xlu0 %1333 }
 0x7b8   : > { %v1343_v59 = vmax.f32 %v1341_v56, 0.0  ;;  %v1338_v60 = vmul.f32 0.0078125, %v1334_v57 }
 0x7ba   : > { %v1347_v61 = vadd.f32 1e-05, %v1343_v59  ;;  %v1342_v62 = vsub.f32 %v1338_v60, %v1340_v58 }
 0x7bc   : > { %2314 = vrsqrt.f32 %v1347_v61  ;;  %v1344_v63 = vmax.f32 %v1342_v62, 0.0 }
 0x7be   : > { %v1348_v3 = vadd.f32 1e-05, %v1344_v63 }
 0x7c0   : > { %2316 = vrsqrt.f32 %v1348_v3  ;;  %v1574_v3 = vsub.s32 5, %v2864_v47 }
 0x7c6   : > { %v2315_v5 = vpop.eup %2314 }
 0x7c7   : > { %v1351_v7 = vmul.f32 %v2315_v5, %v1345_v4  ;;  %v1575_v5 = vrot.slane %v2872_v49, %v1574_v3 }
 0x7c9   : > { %v1357_v12 = vmul.f32 %v1356_v6, %v1351_v7 }
 0x7ca   : > { %v2317_v10 = vpop.eup %2316 }
 0x7cb   : > { %v1352_v11 = vmul.f32 %v2317_v10, %v1346_v9  ;;  %v1363_v15 = vadd.f32 %v1362_v13, %v1357_v12 }
 0x7cd   : > { %v1358_v14 = vmul.f32 %v1356_v6, %v1352_v11 }
 0x7cf   : > { %v1364_v16 = vadd.f32 %v1362_v13, %v1358_v14 }
 0x7d1   : > { %v1365_v23 = vpack.c.bf16 %v1364_v16, %v1363_v15 }
 0x7d3   : > { %1507 = vmatmul.mubr.bf16.vlgmr.msra.gmra.mrb[28].mxu1 %v1365_v23 }
 0x8a6   : > { %v1508_v33 = vpop.f32.mrb[28].mxu1 }
 0x8a7   : > { %v1509_v34 = vadd.f32 %v1508_v33, %v1387_v31  ;;  %v1510_v35 = vpop.f32.mrb[29].mxu1 }
 0x8a8   : > { %v1511_v36 = vadd.f32 %v1510_v35, %v1391_v32  ;;  %v1512_v37 = vpop.f32.mrb[30].mxu1 }
 0x8a9   : > { %v1522_v38 = vmul.f32 0.70710677, %v1509_v34  ;;  %v1513_v39 = vadd.f32 %v1512_v37, %v1387_v31  ;;  %v1514_v40 = vpop.f32.mrb[31].mxu1  ;;  %v1517_v51 = vmul.f32 0.5, %v1509_v34 }
 0x8aa   : > { %v1523_v41 = vmul.f32 0.70710677, %v1511_v36  ;;  %v1515_v42 = vadd.f32 %v1514_v40, %v1391_v32  ;;  %v1518_v55 = vmul.f32 0.5, %v1511_v36 }
 0x8ab   : > { %2318 = verf.f32 %v1522_v38  ;;  %v1524_v43 = vmul.f32 0.70710677, %v1513_v39  ;;  %v1519_v52 = vmul.f32 0.5, %v1513_v39 }
 0x8ac   : > { %2320 = verf.f32 %v1523_v41  ;;  %v1525_v26 = vmul.f32 0.70710677, %v1515_v42  ;;  %v1520_v56 = vmul.f32 0.5, %v1515_v42 }
 0x8ad   : > { %2322 = verf.f32 %v1524_v43 }
 0x8ae   : > { %2324 = verf.f32 %v1525_v26 }
 0x8b5   : > { %v2319_v44 = vpop.eup %2318 }
 0x8b6   : > { %v2321_v48 = vpop.eup %2320  ;;  %v1530_v45 = vadd.f32 1.0, %v2319_v44 }
 0x8b7   : > { %v2323_v54 = vpop.eup %2322  ;;  %v1531_v46 = vadd.f32 1.0, %v2321_v48 }
 0x8b8   : > { %v2325_v50 = vpop.eup %2324  ;;  %v1532_v53 = vadd.f32 1.0, %v2323_v54  ;;  %v1534_v58 = vmul.f32 %v1530_v45, %v1517_v51 }
 0x8b9   : > { %v1533_v57 = vadd.f32 1.0, %v2325_v50  ;;  %v1535_v60 = vmul.f32 %v1531_v46, %v1518_v55 }
 0x8ba   : > { %v1536_v59 = vmul.f32 %v1532_v53, %v1519_v52 }
 0x8bb   : > { %v1537_v61 = vmul.f32 %v1533_v57, %v1520_v56 }
 0x8bc   : > { %v1538_v62 = vpack.c.bf16 %v1536_v59, %v1534_v58 }
 0x8bd   : > { %v1539_v63 = vpack.c.bf16 %v1537_v61, %v1535_v60 }
 0x8bf   : > { %1704 = vmatprep.mubr.bf16.mxu0 %v1539_v63 }
 0x8c0   : > { %1705 = vmatmul.mubr.bf16.vlgmr.msra.gmra.mrb[16].mxu0 %v1538_v62 }
 0x993   : > { %v1988_v4 = vpop.f32.mrb[16].mxu0 }
 0x994   : > { %v1989_v6 = vpop.f32.mrb[17].mxu0 }
 0x995   : > { %v1990_v7 = vadd.f32 %v1989_v6, %v1988_v4  ;;  %v1991_v8 = vpop.f32.mrb[18].mxu0 }
 0x996   : > { %v1992_v9 = vpop.f32.mrb[19].mxu0 }
 0x997   : > { %v1707_v10 = vadd.f32 %v1990_v7, %v1575_v5  ;;  %v1993_v11 = vadd.f32 %v1992_v9, %v1991_v8 }
 0x999   : > { %v1713_v12 = vadd.f32 %v1707_v10, %v2979_v20  ;;  %v1710_v47 = vadd.f32 %v1993_v11, %v1575_v5 }
 0x99b   : > { %1715 = vst [vmem:[%s381_s20] sm:$0xff] %v1713_v12  ;;  %v1714_v49 = vadd.f32 %v1710_v47, %v2982_v24 }
 0x99d   : > { %1716 = vst [vmem:[%s381_s20 + $0x8] sm:$0xff] %v1714_v49 }
 0x99e   : > { %2481 = shalt.err (!%p2478_p13)
}
 0x99f   : > { %s2482_s25 = scalar_lea.hbm %s3013_s13, 256  ;;  %s2486_s14 = scalar_lea.hbm %s3066_s8, 512 }
 0x9a0   : > { %p2483_p9 = scmp.ne.s32.totalorder %s3013_s13, %s2482_s25  ;;  %p2487_p4 = scmp.lt.u32.totalorder %s3013_s13, %s3066_s8 }
 0x9a1   : > { %p2488_p8 = scmp.lt.u32.totalorder %s2486_s14, %s2482_s25  ;;  %p2490_p3 = scmp.lt.u32.totalorder %s2482_s25, %s3013_s13 }
 0x9a2   : > { %p2484_p0 = pnand %p2483_p9, %p2768_p10 }
 0x9a3   : > { %p2489_p6 = por %p2488_p8, %p2487_p4 }
 0x9a4   : > { %p2485_p11 = pneg %p2484_p0 }
 0x9a5   : > { %p2491_p5 = por %p2490_p3, %p2489_p6 }
 0x9a7   : > { %p2492_p7 = pnand %p2491_p5, %p2485_p11 }
 0x9a9   : > { %2495 = shalt.err (!%p2492_p7)
}
 0x9aa   : > { %s2562_s21 = smov 128   ;;  %s2563_s11 = smov 8  }
 0x9ab   : > { %2100 = dma.vmem_to_hbm [thread:$0]  (%p2768_p10), %s3008_s16, 256, %s3013_s13, %s1718_s17, %s2562_s21, %s2562_s21, %s2563_s11  }
 0x9ac PF: > { %s3092_s10 = sld [smem:[#allocation16_spill]]  ;;  %s1746_s9 = sand.u32 1, %s2530_s27  }
 0x9ad   : > { %p3094_p2 = scmp.ge.s32.totalorder %s2542_s30, 2  ;;  %s1747_s18 = scalar_lea.sflag [#allocation4], %s1746_s9 }
 0x9b2   : > { %p3093_p12 = scmp.ne.s32.totalorder %s3092_s10, 0 }
 0x9b4   : > { %p2120_p1 = pnand %p3094_p2, %p3093_p12 }
 0x9b6   : > { %2525 = dma.done.wait (!%p2120_p1), %s1747_s18, 256  }
 0x9b7   : > { %2527 = vsyncadd (!%p2120_p1), %s1747_s18, 4294967040  ;;  %p23_p13 = scmp.ge.s32.totalorder %s2758_s24, 4   ;;  %s3095_s27 = smov %s2534_s28 }
 0x9b8   : > { %s3096_s28 = smov %s2538_s29  ;;  %s3097_s29 = smov %s2774_s22 }
 0x9b9   : > { %s3098_s30 = smov %s2758_s24  ;;  %25 = sbr.rel (!%p23_p13) target bundleno = 9 (0x9), region = 113 }
 0x9c0   :  { %1752 = vsyncpa [#allocation3], 1 }
 0x9c1   :  { %1754 = vsyncpa [#allocation3 + $0x1], 1 }
 0x9c2   :  { %1755 = vsyncpa [#allocation6], 1 }
 0x9c3   :  { %1756 = vsyncpa [#allocation9], 1 }
 0x9c4   :  { %1757 = vsyncpa [#allocation4], 1 }
 0x9c5   :  { %1759 = vsyncpa [#allocation4 + $0x1], 1 }

</bundles_post_ra>
